<compile_context>
chip_gen: v5e
topology: v5e:2x2
jax: 0.10.0
libtpu: 0.0.40
codegen_flags: <defaults>
</compile_context>

<pallas_src>
import math
import jax
import jax.numpy as jnp
import numpy as np
from jax import lax
from jax.experimental import pallas as pl
from jax.experimental.pallas import tpu as pltpu  # noqa: F401  (TPU backend)

# ---- small shapes consistent with the module ----
B = 2            # batch
M = 8            # block (query) length
S = 8            # attn_span == cache size
L = S + M        # full (cache + current) length
H = 32           # hidden_size
K = 4            # nb_heads
D = H // K       # head_dim
INNER = 64       # inner_hidden_size
EPS = 1e-5       # nn.LayerNorm default eps
SENTINEL = -1000000.0
NEG_BIG = -1e30


def _layernorm(x, w, b):
    mean = jnp.mean(x, axis=-1, keepdims=True)
    cen = x - mean
    var = jnp.mean(cen * cen, axis=-1, keepdims=True)
    return cen * lax.rsqrt(var + EPS) * w + b


# ---------------------------------------------------------------------------
# Fused kernel: LayerNorm1 -> fused QKV -> banded attention -> out-proj ->
#               residual+ReLU -> LayerNorm2 -> FFN -> final combine.
# All rows processed with batch flattened into the sublane axis; heads kept
# packed in the lane axis and addressed with static lane slices.
# ---------------------------------------------------------------------------
def fused_layer_kernel(h_all_ref, pe_bd_ref, n1w_ref, n1b_ref, wqkv_ref,
                       wo_ref, n2w_ref, n2b_ref, w1_ref, b1_ref, w2_ref,
                       b2_ref, o_ref):
    f32 = jnp.float32
    h_all = h_all_ref[...]                                   # (B*L, H)

    # ---- LayerNorm1 over cache + current, all batches at once
    h_all_n = _layernorm(h_all, n1w_ref[...], n1b_ref[...])  # (B*L, H)

    # ---- fused Q/K/V projection: one (B*L, H) @ (H, 3H) MXU matmul
    qkv = jnp.dot(h_all_n, wqkv_ref[...], preferred_element_type=f32)
    q_all = qkv[:, 0:H]
    k_all = qkv[:, H:2 * H]
    v_all = qkv[:, 2 * H:3 * H]

    # current-block rows (last M of each batch): queries + residual input
    q_cur = jnp.concatenate(
        [q_all[b * L + S:(b + 1) * L, :] for b in range(B)], axis=0)  # (B*M, H)
    h_cur = jnp.concatenate(
        [h_all[b * L + S:(b + 1) * L, :] for b in range(B)], axis=0)  # (B*M, H)

    # ---- positional scores for ALL batches/heads with one matmul:
    # pe_bd = block_diag(key_pe) of shape (H, K*S), so
    # pos_all[r, kk*S + j] = q_cur[r, kk*D:(kk+1)*D] . key_pe[:, j]
    pos_all = jnp.dot(q_cur, pe_bd_ref[...], preferred_element_type=f32)  # (B*M, K*S)

    # band geometry shared by every batch/head: rel = key_col - query_row
    col = lax.broadcasted_iota(jnp.int32, (M, L), 1)
    row = lax.broadcasted_iota(jnp.int32, (M, L), 0)
    rel = col - row
    in_band = (rel >= 0) & (rel < S)
    inv_scale = 1.0 / math.sqrt(D)

    # ---- banded attention (statically unrolled over B*K = 8 tiny head problems)
    out_rows = []
    for b in range(B):
        head_outs = []
        for kk in range(K):
            q_h = q_cur[b * M:(b + 1) * M, kk * D:(kk + 1) * D]   # (M, D)
            k_h = k_all[b * L:(b + 1) * L, kk * D:(kk + 1) * D]   # (L, D)
            v_h = v_all[b * L:(b + 1) * L, kk * D:(kk + 1) * D]   # (L, D)

            # content scores for the full window on the MXU: (M, L)
            full = lax.dot_general(q_h, k_h, (((1,), (1,)), ((), ())),
                                   preferred_element_type=f32)
            # faithful "==0 -> -1e6" sentinel inherited from the reference _unskew trick
            cont = jnp.where(full == 0.0, SENTINEL, full)

            # skew (M, S) positional scores into (M, L): pos_sk[i, l] = pos_h[i, l - i]
            pos_h = pos_all[b * M:(b + 1) * M, kk * S:(kk + 1) * S]  # (M, S)
            pos_sk = jnp.zeros((M, L), f32)
            for j in range(S):
                pos_sk = jnp.where(rel == j, pos_h[:, j:j + 1], pos_sk)

            logits = jnp.where(in_band, (cont + pos_sk) * inv_scale, NEG_BIG)
            mx = jnp.max(logits, axis=-1, keepdims=True)
            e = jnp.exp(logits - mx)
            p = e / jnp.sum(e, axis=-1, keepdims=True)               # (M, L)

            # out-of-band probabilities are exactly 0, so this equals skew(attn) @ v
            head_outs.append(jnp.dot(p, v_h, preferred_element_type=f32))  # (M, D)
        out_rows.append(jnp.concatenate(head_outs, axis=1))                # (M, H)
    ao = jnp.concatenate(out_rows, axis=0)                                  # (B*M, H)

    # ---- epilogue: out-proj, residual + ReLU, LayerNorm2, FFN, final combine
    attn_out = jnp.dot(ao, wo_ref[...], preferred_element_type=f32)
    dec2 = h_cur + jnp.maximum(attn_out, 0.0)
    x2 = _layernorm(dec2, n2w_ref[...], n2b_ref[...])
    h1 = jnp.maximum(
        jnp.dot(x2, w1_ref[...], preferred_element_type=f32) + b1_ref[...], 0.0)
    h2 = jnp.dot(h1, w2_ref[...], preferred_element_type=f32) + b2_ref[...]
    # TODO(synk): dropout layers are identity at inference (p effectively 0); omitted.
    o_ref[...] = jnp.maximum(h2, 0.0) + dec2


# ---------------------------------------------------------------------------
# Wrapper: build fused/blocked constants in XLA, one grid-less pallas_call.
# ---------------------------------------------------------------------------
def transformer_seq_layer(h, h_cache, key_pe, p):
    f32 = jnp.float32
    # cache/current concat + batch flattening done outside the kernel (cheap XLA glue)
    h_all = jnp.concatenate([h_cache, h], axis=1).reshape(B * L, H)
    # fused QKV weight (H, 3H) and block-diagonal positional matrix (H, K*S)
    wqkv = jnp.concatenate([p["wqT"], p["wkT"], p["wvT"]], axis=1)
    pe_bd = jnp.kron(jnp.eye(K, dtype=f32), key_pe[0])

    out_flat = pl.pallas_call(
        fused_layer_kernel,
        out_shape=jax.ShapeDtypeStruct((B * M, H), f32),
    )(h_all, pe_bd, p["n1w"], p["n1b"], wqkv, p["woT"], p["n2w"], p["n2b"],
      p["w1T"], p["b1"], p["w2T"], p["b2"])
    return out_flat.reshape(B, M, H)


# ---------------------------------------------------------------------------
# Pure-JAX reference (literal translation of the PyTorch code, incl. skew/unskew)
# ---------------------------------------------------------------------------
def _unskew_ref(X):
    BK, Mx, Lx = X.shape
    Sx = Lx - Mx
    X = X.reshape(BK, -1)
    X = jnp.pad(X, ((0, 0), (0, Mx)))
    X = X.reshape(BK, Mx, Mx + Sx + 1)
    return X[:, :, :Sx]


def _skew_ref(X, pad_value):
    BK, Mx, Sx = X.shape
    X = jnp.pad(X, ((0, 0), (0, 0), (0, Mx + 1)), constant_values=pad_value)
    X = X.reshape(BK, -1)
    X = X[:, :-Mx]
    return X.reshape(BK, Mx, Mx + Sx)


def reference(h, h_cache, key_pe, p):
    h_all = jnp.concatenate([h_cache, h], axis=1)
    h_all_n = _layernorm(h_all, p["n1w"][0], p["n1b"][0])
    h_norm = h_all_n[:, -M:, :]

    def head_reshape(x):
        Bx, T, _ = x.shape
        return x.reshape(Bx, T, K, D).transpose(0, 2, 1, 3).reshape(Bx * K, T, D)

    q = head_reshape(h_norm @ p["wqT"])
    k = head_reshape(h_all_n @ p["wkT"])
    v = head_reshape(h_all_n @ p["wvT"])

    attn_cont = jnp.einsum("bmd,bld->bml", q, k)
    attn_cont = _unskew_ref(attn_cont)
    attn_cont = jnp.where(attn_cont == 0, SENTINEL, attn_cont)
    attn_pos = jnp.einsum("bmd,ds->bms", q, key_pe[0])
    attn = (attn_cont + attn_pos) / math.sqrt(D)
    attn = jax.nn.softmax(attn, axis=-1)
    A = _skew_ref(attn, 0.0)
    out = jnp.einsum("bml,bld->bmd", A, v)
    out = out.reshape(B, K, M, D).transpose(0, 2, 1, 3).reshape(B, M, H)
    out = out @ p["woT"]

    dec2 = h + jax.nn.relu(out)
    x = _layernorm(dec2, p["n2w"][0], p["n2b"][0])
    ff = jax.nn.relu(x @ p["w1T"] + p["b1"]) @ p["w2T"] + p["b2"]
    return jax.nn.relu(ff) + dec2


# ---------------------------------------------------------------------------
if __name__ == "__main__":
    key = jax.random.PRNGKey(0)
    ks = jax.random.split(key, 16)
    f32 = jnp.float32

    h = jax.random.normal(ks[0], (B, M, H), f32)
    h_cache = jax.random.normal(ks[1], (B, S, H), f32)
    key_pe = jax.random.normal(ks[2], (1, D, S), f32) * 0.1

    def lin(k_, out_f, in_f, scale=0.1):
        return jax.random.normal(k_, (out_f, in_f), f32) * scale

    # parameters in PyTorch convention (out, in), then pre-transposed for the kernel
    wq = lin(ks[3], H, H); wk = lin(ks[4], H, H)
    wv = lin(ks[5], H, H); wo = lin(ks[6], H, H)
    w1 = lin(ks[7], INNER, H); b1 = jax.random.normal(ks[8], (INNER,), f32) * 0.1
    w2 = lin(ks[9], H, INNER); b2 = jax.random.normal(ks[10], (H,), f32) * 0.1

    params = dict(
        n1w=(1.0 + 0.1 * jax.random.normal(ks[11], (H,), f32)).reshape(1, H),
        n1b=(0.1 * jax.random.normal(ks[12], (H,), f32)).reshape(1, H),
        n2w=(1.0 + 0.1 * jax.random.normal(ks[13], (H,), f32)).reshape(1, H),
        n2b=(0.1 * jax.random.normal(ks[14], (H,), f32)).reshape(1, H),
        wqT=wq.T, wkT=wk.T, wvT=wv.T, woT=wo.T,
        w1T=w1.T, b1=b1.reshape(1, INNER),
        w2T=w2.T, b2=b2.reshape(1, H),
    )

    out = jax.jit(transformer_seq_layer)(h, h_cache, key_pe, params)
    out = jax.block_until_ready(out)

    ref = reference(h, h_cache, key_pe, params)
    np.testing.assert_allclose(np.asarray(out), np.asarray(ref), rtol=2e-3, atol=2e-3)

    print("KERNEL_OK")
</pallas_src>

<mosaic_0001>
module attributes {stable_mosaic.version = 11 : i64} {
  func.func @fused_layer_kernel(%arg0: memref<32x32xf32, #tpu.memory_space<vmem>>, %arg1: memref<32x32xf32, #tpu.memory_space<vmem>>, %arg2: memref<1x32xf32, #tpu.memory_space<vmem>>, %arg3: memref<1x32xf32, #tpu.memory_space<vmem>>, %arg4: memref<32x96xf32, #tpu.memory_space<vmem>>, %arg5: memref<32x32xf32, #tpu.memory_space<vmem>>, %arg6: memref<1x32xf32, #tpu.memory_space<vmem>>, %arg7: memref<1x32xf32, #tpu.memory_space<vmem>>, %arg8: memref<32x64xf32, #tpu.memory_space<vmem>>, %arg9: memref<1x64xf32, #tpu.memory_space<vmem>>, %arg10: memref<64x32xf32, #tpu.memory_space<vmem>>, %arg11: memref<1x32xf32, #tpu.memory_space<vmem>>, %arg12: memref<16x32xf32, #tpu.memory_space<vmem>>) attributes {dimension_semantics = [], scalar_prefetch = 0 : i64, scratch_operands = 0 : i64, tpu.core_type = #tpu.core_type<tc>} {
    %c0 = arith.constant 0 : index
    %c0_0 = arith.constant 0 : index
    %0 = vector.load %arg0[%c0, %c0_0] : memref<32x32xf32, #tpu.memory_space<vmem>>, vector<32x32xf32>
    %c0_1 = arith.constant 0 : index
    %c0_2 = arith.constant 0 : index
    %1 = vector.load %arg2[%c0_1, %c0_2] : memref<1x32xf32, #tpu.memory_space<vmem>>, vector<1x32xf32>
    %c0_3 = arith.constant 0 : index
    %c0_4 = arith.constant 0 : index
    %2 = vector.load %arg3[%c0_3, %c0_4] : memref<1x32xf32, #tpu.memory_space<vmem>>, vector<1x32xf32>
    %cst = arith.constant dense<0.000000e+00> : vector<32xf32>
    %3 = vector.multi_reduction <add>, %0, %cst [1] : vector<32x32xf32> to vector<32xf32>
    %4 = vector.shape_cast %3 : vector<32xf32> to vector<32x1xf32>
    %cst_5 = arith.constant 3.200000e+01 : f32
    %5 = vector.broadcast %cst_5 : f32 to vector<32x1xf32>
    %6 = arith.divf %4, %5 : vector<32x1xf32>
    %7 = vector.broadcast %6 : vector<32x1xf32> to vector<32x32xf32>
    %8 = arith.subf %0, %7 : vector<32x32xf32>
    %9 = arith.mulf %8, %8 : vector<32x32xf32>
    %cst_6 = arith.constant dense<0.000000e+00> : vector<32xf32>
    %10 = vector.multi_reduction <add>, %9, %cst_6 [1] : vector<32x32xf32> to vector<32xf32>
    %11 = vector.shape_cast %10 : vector<32xf32> to vector<32x1xf32>
    %cst_7 = arith.constant 3.200000e+01 : f32
    %12 = vector.broadcast %cst_7 : f32 to vector<32x1xf32>
    %13 = arith.divf %11, %12 : vector<32x1xf32>
    %cst_8 = arith.constant 9.99999974E-6 : f32
    %14 = vector.broadcast %cst_8 : f32 to vector<32x1xf32>
    %15 = arith.addf %13, %14 : vector<32x1xf32>
    %16 = math.rsqrt %15 : vector<32x1xf32>
    %17 = vector.broadcast %16 : vector<32x1xf32> to vector<32x32xf32>
    %18 = arith.mulf %8, %17 : vector<32x32xf32>
    %19 = vector.broadcast %1 : vector<1x32xf32> to vector<32x32xf32>
    %20 = arith.mulf %18, %19 : vector<32x32xf32>
    %21 = vector.broadcast %2 : vector<1x32xf32> to vector<32x32xf32>
    %22 = arith.addf %20, %21 : vector<32x32xf32>
    %c0_9 = arith.constant 0 : index
    %c0_10 = arith.constant 0 : index
    %23 = vector.load %arg4[%c0_9, %c0_10] : memref<32x96xf32, #tpu.memory_space<vmem>>, vector<32x96xf32>
    %cst_11 = arith.constant dense<0.000000e+00> : vector<32x96xf32>
    %24 = tpu.matmul %22, %23, %cst_11 {dimension_numbers = #tpu.dot_dimension_numbers<[1], [0], [0], [1], [0, 0, 1, 1], [], []>} : vector<32x32xf32>, vector<32x96xf32>, vector<32x96xf32> -> vector<32x96xf32>
    %25 = vector.extract_strided_slice %24 {offsets = [0, 0], sizes = [32, 32], strides = [1, 1]} : vector<32x96xf32> to vector<32x32xf32>
    %26 = vector.extract_strided_slice %24 {offsets = [0, 32], sizes = [32, 32], strides = [1, 1]} : vector<32x96xf32> to vector<32x32xf32>
    %27 = vector.extract_strided_slice %24 {offsets = [0, 64], sizes = [32, 32], strides = [1, 1]} : vector<32x96xf32> to vector<32x32xf32>
    %28 = vector.extract_strided_slice %25 {offsets = [8, 0], sizes = [8, 32], strides = [1, 1]} : vector<32x32xf32> to vector<8x32xf32>
    %29 = vector.extract_strided_slice %25 {offsets = [24, 0], sizes = [8, 32], strides = [1, 1]} : vector<32x32xf32> to vector<8x32xf32>
    %30 = tpu.concatenate %28, %29 in 0 : vector<8x32xf32>, vector<8x32xf32> -> vector<16x32xf32>
    %31 = vector.extract_strided_slice %0 {offsets = [8, 0], sizes = [8, 32], strides = [1, 1]} : vector<32x32xf32> to vector<8x32xf32>
    %32 = vector.extract_strided_slice %0 {offsets = [24, 0], sizes = [8, 32], strides = [1, 1]} : vector<32x32xf32> to vector<8x32xf32>
    %33 = tpu.concatenate %31, %32 in 0 : vector<8x32xf32>, vector<8x32xf32> -> vector<16x32xf32>
    %c0_12 = arith.constant 0 : index
    %c0_13 = arith.constant 0 : index
    %34 = vector.load %arg1[%c0_12, %c0_13] : memref<32x32xf32, #tpu.memory_space<vmem>>, vector<32x32xf32>
    %cst_14 = arith.constant dense<0.000000e+00> : vector<16x32xf32>
    %35 = tpu.matmul %30, %34, %cst_14 {dimension_numbers = #tpu.dot_dimension_numbers<[1], [0], [0], [1], [0, 0, 1, 1], [], []>} : vector<16x32xf32>, vector<32x32xf32>, vector<16x32xf32> -> vector<16x32xf32>
    %36 = tpu.iota {dimensions = array<i32: 1>} : vector<8x16xi32>
    %37 = tpu.iota {dimensions = array<i32: 0>} : vector<8x16xi32>
    %38 = arith.subi %36, %37 : vector<8x16xi32>
    %c0_i32 = arith.constant 0 : i32
    %39 = vector.broadcast %c0_i32 : i32 to vector<8x16xi32>
    %40 = arith.cmpi sge, %38, %39 : vector<8x16xi32>
    %c8_i32 = arith.constant 8 : i32
    %41 = vector.broadcast %c8_i32 : i32 to vector<8x16xi32>
    %42 = arith.cmpi slt, %38, %41 : vector<8x16xi32>
    %43 = arith.andi %40, %42 : vector<8x16xi1>
    %44 = vector.extract_strided_slice %30 {offsets = [0, 0], sizes = [8, 8], strides = [1, 1]} : vector<16x32xf32> to vector<8x8xf32>
    %45 = vector.extract_strided_slice %26 {offsets = [0, 0], sizes = [16, 8], strides = [1, 1]} : vector<32x32xf32> to vector<16x8xf32>
    %46 = vector.extract_strided_slice %27 {offsets = [0, 0], sizes = [16, 8], strides = [1, 1]} : vector<32x32xf32> to vector<16x8xf32>
    %cst_15 = arith.constant dense<0.000000e+00> : vector<8x16xf32>
    %47 = tpu.matmul %44, %45, %cst_15 {dimension_numbers = #tpu.dot_dimension_numbers<[1], [1], [0], [0], [0, 0, 1, 0], [], []>} : vector<8x8xf32>, vector<16x8xf32>, vector<8x16xf32> -> vector<8x16xf32>
    %cst_16 = arith.constant 0.000000e+00 : f32
    %48 = vector.broadcast %cst_16 : f32 to vector<8x16xf32>
    %49 = arith.cmpf oeq, %47, %48 : vector<8x16xf32>
    %cst_17 = arith.constant -1.000000e+06 : f32
    %50 = vector.broadcast %cst_17 : f32 to vector<8x16xf32>
    %51 = arith.select %49, %50, %47 : vector<8x16xi1>, vector<8x16xf32>
    %52 = vector.extract_strided_slice %35 {offsets = [0, 0], sizes = [8, 8], strides = [1, 1]} : vector<16x32xf32> to vector<8x8xf32>
    %cst_18 = arith.constant 0.000000e+00 : f32
    %53 = vector.broadcast %cst_18 : f32 to vector<8x16xf32>
    %c0_i32_19 = arith.constant 0 : i32
    %54 = vector.broadcast %c0_i32_19 : i32 to vector<8x16xi32>
    %55 = arith.cmpi eq, %38, %54 : vector<8x16xi32>
    %56 = vector.extract_strided_slice %52 {offsets = [0, 0], sizes = [8, 1], strides = [1, 1]} : vector<8x8xf32> to vector<8x1xf32>
    %57 = vector.shape_cast %56 : vector<8x1xf32> to vector<8x1xf32>
    %58 = vector.broadcast %57 : vector<8x1xf32> to vector<8x16xf32>
    %59 = arith.select %55, %58, %53 : vector<8x16xi1>, vector<8x16xf32>
    %c1_i32 = arith.constant 1 : i32
    %60 = vector.broadcast %c1_i32 : i32 to vector<8x16xi32>
    %61 = arith.cmpi eq, %38, %60 : vector<8x16xi32>
    %62 = vector.extract_strided_slice %52 {offsets = [0, 1], sizes = [8, 1], strides = [1, 1]} : vector<8x8xf32> to vector<8x1xf32>
    %63 = vector.shape_cast %62 : vector<8x1xf32> to vector<8x1xf32>
    %64 = vector.broadcast %63 : vector<8x1xf32> to vector<8x16xf32>
    %65 = arith.select %61, %64, %59 : vector<8x16xi1>, vector<8x16xf32>
    %c2_i32 = arith.constant 2 : i32
    %66 = vector.broadcast %c2_i32 : i32 to vector<8x16xi32>
    %67 = arith.cmpi eq, %38, %66 : vector<8x16xi32>
    %68 = vector.extract_strided_slice %52 {offsets = [0, 2], sizes = [8, 1], strides = [1, 1]} : vector<8x8xf32> to vector<8x1xf32>
    %69 = vector.shape_cast %68 : vector<8x1xf32> to vector<8x1xf32>
    %70 = vector.broadcast %69 : vector<8x1xf32> to vector<8x16xf32>
    %71 = arith.select %67, %70, %65 : vector<8x16xi1>, vector<8x16xf32>
    %c3_i32 = arith.constant 3 : i32
    %72 = vector.broadcast %c3_i32 : i32 to vector<8x16xi32>
    %73 = arith.cmpi eq, %38, %72 : vector<8x16xi32>
    %74 = vector.extract_strided_slice %52 {offsets = [0, 3], sizes = [8, 1], strides = [1, 1]} : vector<8x8xf32> to vector<8x1xf32>
    %75 = vector.shape_cast %74 : vector<8x1xf32> to vector<8x1xf32>
    %76 = vector.broadcast %75 : vector<8x1xf32> to vector<8x16xf32>
    %77 = arith.select %73, %76, %71 : vector<8x16xi1>, vector<8x16xf32>
    %c4_i32 = arith.constant 4 : i32
    %78 = vector.broadcast %c4_i32 : i32 to vector<8x16xi32>
    %79 = arith.cmpi eq, %38, %78 : vector<8x16xi32>
    %80 = vector.extract_strided_slice %52 {offsets = [0, 4], sizes = [8, 1], strides = [1, 1]} : vector<8x8xf32> to vector<8x1xf32>
    %81 = vector.shape_cast %80 : vector<8x1xf32> to vector<8x1xf32>
    %82 = vector.broadcast %81 : vector<8x1xf32> to vector<8x16xf32>
    %83 = arith.select %79, %82, %77 : vector<8x16xi1>, vector<8x16xf32>
    %c5_i32 = arith.constant 5 : i32
    %84 = vector.broadcast %c5_i32 : i32 to vector<8x16xi32>
    %85 = arith.cmpi eq, %38, %84 : vector<8x16xi32>
    %86 = vector.extract_strided_slice %52 {offsets = [0, 5], sizes = [8, 1], strides = [1, 1]} : vector<8x8xf32> to vector<8x1xf32>
    %87 = vector.shape_cast %86 : vector<8x1xf32> to vector<8x1xf32>
    %88 = vector.broadcast %87 : vector<8x1xf32> to vector<8x16xf32>
    %89 = arith.select %85, %88, %83 : vector<8x16xi1>, vector<8x16xf32>
    %c6_i32 = arith.constant 6 : i32
    %90 = vector.broadcast %c6_i32 : i32 to vector<8x16xi32>
    %91 = arith.cmpi eq, %38, %90 : vector<8x16xi32>
    %92 = vector.extract_strided_slice %52 {offsets = [0, 6], sizes = [8, 1], strides = [1, 1]} : vector<8x8xf32> to vector<8x1xf32>
    %93 = vector.shape_cast %92 : vector<8x1xf32> to vector<8x1xf32>
    %94 = vector.broadcast %93 : vector<8x1xf32> to vector<8x16xf32>
    %95 = arith.select %91, %94, %89 : vector<8x16xi1>, vector<8x16xf32>
    %c7_i32 = arith.constant 7 : i32
    %96 = vector.broadcast %c7_i32 : i32 to vector<8x16xi32>
    %97 = arith.cmpi eq, %38, %96 : vector<8x16xi32>
    %98 = vector.extract_strided_slice %52 {offsets = [0, 7], sizes = [8, 1], strides = [1, 1]} : vector<8x8xf32> to vector<8x1xf32>
    %99 = vector.shape_cast %98 : vector<8x1xf32> to vector<8x1xf32>
    %100 = vector.broadcast %99 : vector<8x1xf32> to vector<8x16xf32>
    %101 = arith.select %97, %100, %95 : vector<8x16xi1>, vector<8x16xf32>
    %102 = arith.addf %51, %101 : vector<8x16xf32>
    %cst_20 = arith.constant 0.353553385 : f32
    %103 = vector.broadcast %cst_20 : f32 to vector<8x16xf32>
    %104 = arith.mulf %102, %103 : vector<8x16xf32>
    %cst_21 = arith.constant -1.000000e+30 : f32
    %105 = vector.broadcast %cst_21 : f32 to vector<8x16xf32>
    %106 = arith.select %43, %104, %105 : vector<8x16xi1>, vector<8x16xf32>
    %cst_22 = arith.constant dense<0xFF800000> : vector<8xf32>
    %107 = vector.multi_reduction <maximumf>, %106, %cst_22 [1] : vector<8x16xf32> to vector<8xf32>
    %108 = vector.shape_cast %107 : vector<8xf32> to vector<8x1xf32>
    %109 = vector.broadcast %108 : vector<8x1xf32> to vector<8x16xf32>
    %110 = arith.subf %106, %109 : vector<8x16xf32>
    %111 = math.exp %110 : vector<8x16xf32>
    %cst_23 = arith.constant dense<0.000000e+00> : vector<8xf32>
    %112 = vector.multi_reduction <add>, %111, %cst_23 [1] : vector<8x16xf32> to vector<8xf32>
    %113 = vector.shape_cast %112 : vector<8xf32> to vector<8x1xf32>
    %114 = vector.broadcast %113 : vector<8x1xf32> to vector<8x16xf32>
    %115 = arith.divf %111, %114 : vector<8x16xf32>
    %cst_24 = arith.constant dense<0.000000e+00> : vector<8x8xf32>
    %116 = tpu.matmul %115, %46, %cst_24 {dimension_numbers = #tpu.dot_dimension_numbers<[1], [0], [0], [1], [0, 0, 1, 1], [], []>} : vector<8x16xf32>, vector<16x8xf32>, vector<8x8xf32> -> vector<8x8xf32>
    %117 = vector.extract_strided_slice %30 {offsets = [0, 8], sizes = [8, 8], strides = [1, 1]} : vector<16x32xf32> to vector<8x8xf32>
    %118 = vector.extract_strided_slice %26 {offsets = [0, 8], sizes = [16, 8], strides = [1, 1]} : vector<32x32xf32> to vector<16x8xf32>
    %119 = vector.extract_strided_slice %27 {offsets = [0, 8], sizes = [16, 8], strides = [1, 1]} : vector<32x32xf32> to vector<16x8xf32>
    %cst_25 = arith.constant dense<0.000000e+00> : vector<8x16xf32>
    %120 = tpu.matmul %117, %118, %cst_25 {dimension_numbers = #tpu.dot_dimension_numbers<[1], [1], [0], [0], [0, 0, 1, 0], [], []>} : vector<8x8xf32>, vector<16x8xf32>, vector<8x16xf32> -> vector<8x16xf32>
    %cst_26 = arith.constant 0.000000e+00 : f32
    %121 = vector.broadcast %cst_26 : f32 to vector<8x16xf32>
    %122 = arith.cmpf oeq, %120, %121 : vector<8x16xf32>
    %cst_27 = arith.constant -1.000000e+06 : f32
    %123 = vector.broadcast %cst_27 : f32 to vector<8x16xf32>
    %124 = arith.select %122, %123, %120 : vector<8x16xi1>, vector<8x16xf32>
    %125 = vector.extract_strided_slice %35 {offsets = [0, 8], sizes = [8, 8], strides = [1, 1]} : vector<16x32xf32> to vector<8x8xf32>
    %cst_28 = arith.constant 0.000000e+00 : f32
    %126 = vector.broadcast %cst_28 : f32 to vector<8x16xf32>
    %c0_i32_29 = arith.constant 0 : i32
    %127 = vector.broadcast %c0_i32_29 : i32 to vector<8x16xi32>
    %128 = arith.cmpi eq, %38, %127 : vector<8x16xi32>
    %129 = vector.extract_strided_slice %125 {offsets = [0, 0], sizes = [8, 1], strides = [1, 1]} : vector<8x8xf32> to vector<8x1xf32>
    %130 = vector.shape_cast %129 : vector<8x1xf32> to vector<8x1xf32>
    %131 = vector.broadcast %130 : vector<8x1xf32> to vector<8x16xf32>
    %132 = arith.select %128, %131, %126 : vector<8x16xi1>, vector<8x16xf32>
    %c1_i32_30 = arith.constant 1 : i32
    %133 = vector.broadcast %c1_i32_30 : i32 to vector<8x16xi32>
    %134 = arith.cmpi eq, %38, %133 : vector<8x16xi32>
    %135 = vector.extract_strided_slice %125 {offsets = [0, 1], sizes = [8, 1], strides = [1, 1]} : vector<8x8xf32> to vector<8x1xf32>
    %136 = vector.shape_cast %135 : vector<8x1xf32> to vector<8x1xf32>
    %137 = vector.broadcast %136 : vector<8x1xf32> to vector<8x16xf32>
    %138 = arith.select %134, %137, %132 : vector<8x16xi1>, vector<8x16xf32>
    %c2_i32_31 = arith.constant 2 : i32
    %139 = vector.broadcast %c2_i32_31 : i32 to vector<8x16xi32>
    %140 = arith.cmpi eq, %38, %139 : vector<8x16xi32>
    %141 = vector.extract_strided_slice %125 {offsets = [0, 2], sizes = [8, 1], strides = [1, 1]} : vector<8x8xf32> to vector<8x1xf32>
    %142 = vector.shape_cast %141 : vector<8x1xf32> to vector<8x1xf32>
    %143 = vector.broadcast %142 : vector<8x1xf32> to vector<8x16xf32>
    %144 = arith.select %140, %143, %138 : vector<8x16xi1>, vector<8x16xf32>
    %c3_i32_32 = arith.constant 3 : i32
    %145 = vector.broadcast %c3_i32_32 : i32 to vector<8x16xi32>
    %146 = arith.cmpi eq, %38, %145 : vector<8x16xi32>
    %147 = vector.extract_strided_slice %125 {offsets = [0, 3], sizes = [8, 1], strides = [1, 1]} : vector<8x8xf32> to vector<8x1xf32>
    %148 = vector.shape_cast %147 : vector<8x1xf32> to vector<8x1xf32>
    %149 = vector.broadcast %148 : vector<8x1xf32> to vector<8x16xf32>
    %150 = arith.select %146, %149, %144 : vector<8x16xi1>, vector<8x16xf32>
    %c4_i32_33 = arith.constant 4 : i32
    %151 = vector.broadcast %c4_i32_33 : i32 to vector<8x16xi32>
    %152 = arith.cmpi eq, %38, %151 : vector<8x16xi32>
    %153 = vector.extract_strided_slice %125 {offsets = [0, 4], sizes = [8, 1], strides = [1, 1]} : vector<8x8xf32> to vector<8x1xf32>
    %154 = vector.shape_cast %153 : vector<8x1xf32> to vector<8x1xf32>
    %155 = vector.broadcast %154 : vector<8x1xf32> to vector<8x16xf32>
    %156 = arith.select %152, %155, %150 : vector<8x16xi1>, vector<8x16xf32>
    %c5_i32_34 = arith.constant 5 : i32
    %157 = vector.broadcast %c5_i32_34 : i32 to vector<8x16xi32>
    %158 = arith.cmpi eq, %38, %157 : vector<8x16xi32>
    %159 = vector.extract_strided_slice %125 {offsets = [0, 5], sizes = [8, 1], strides = [1, 1]} : vector<8x8xf32> to vector<8x1xf32>
    %160 = vector.shape_cast %159 : vector<8x1xf32> to vector<8x1xf32>
    %161 = vector.broadcast %160 : vector<8x1xf32> to vector<8x16xf32>
    %162 = arith.select %158, %161, %156 : vector<8x16xi1>, vector<8x16xf32>
    %c6_i32_35 = arith.constant 6 : i32
    %163 = vector.broadcast %c6_i32_35 : i32 to vector<8x16xi32>
    %164 = arith.cmpi eq, %38, %163 : vector<8x16xi32>
    %165 = vector.extract_strided_slice %125 {offsets = [0, 6], sizes = [8, 1], strides = [1, 1]} : vector<8x8xf32> to vector<8x1xf32>
    %166 = vector.shape_cast %165 : vector<8x1xf32> to vector<8x1xf32>
    %167 = vector.broadcast %166 : vector<8x1xf32> to vector<8x16xf32>
    %168 = arith.select %164, %167, %162 : vector<8x16xi1>, vector<8x16xf32>
    %c7_i32_36 = arith.constant 7 : i32
    %169 = vector.broadcast %c7_i32_36 : i32 to vector<8x16xi32>
    %170 = arith.cmpi eq, %38, %169 : vector<8x16xi32>
    %171 = vector.extract_strided_slice %125 {offsets = [0, 7], sizes = [8, 1], strides = [1, 1]} : vector<8x8xf32> to vector<8x1xf32>
    %172 = vector.shape_cast %171 : vector<8x1xf32> to vector<8x1xf32>
    %173 = vector.broadcast %172 : vector<8x1xf32> to vector<8x16xf32>
    %174 = arith.select %170, %173, %168 : vector<8x16xi1>, vector<8x16xf32>
    %175 = arith.addf %124, %174 : vector<8x16xf32>
    %cst_37 = arith.constant 0.353553385 : f32
    %176 = vector.broadcast %cst_37 : f32 to vector<8x16xf32>
    %177 = arith.mulf %175, %176 : vector<8x16xf32>
    %cst_38 = arith.constant -1.000000e+30 : f32
    %178 = vector.broadcast %cst_38 : f32 to vector<8x16xf32>
    %179 = arith.select %43, %177, %178 : vector<8x16xi1>, vector<8x16xf32>
    %cst_39 = arith.constant dense<0xFF800000> : vector<8xf32>
    %180 = vector.multi_reduction <maximumf>, %179, %cst_39 [1] : vector<8x16xf32> to vector<8xf32>
    %181 = vector.shape_cast %180 : vector<8xf32> to vector<8x1xf32>
    %182 = vector.broadcast %181 : vector<8x1xf32> to vector<8x16xf32>
    %183 = arith.subf %179, %182 : vector<8x16xf32>
    %184 = math.exp %183 : vector<8x16xf32>
    %cst_40 = arith.constant dense<0.000000e+00> : vector<8xf32>
    %185 = vector.multi_reduction <add>, %184, %cst_40 [1] : vector<8x16xf32> to vector<8xf32>
    %186 = vector.shape_cast %185 : vector<8xf32> to vector<8x1xf32>
    %187 = vector.broadcast %186 : vector<8x1xf32> to vector<8x16xf32>
    %188 = arith.divf %184, %187 : vector<8x16xf32>
    %cst_41 = arith.constant dense<0.000000e+00> : vector<8x8xf32>
    %189 = tpu.matmul %188, %119, %cst_41 {dimension_numbers = #tpu.dot_dimension_numbers<[1], [0], [0], [1], [0, 0, 1, 1], [], []>} : vector<8x16xf32>, vector<16x8xf32>, vector<8x8xf32> -> vector<8x8xf32>
    %190 = vector.extract_strided_slice %30 {offsets = [0, 16], sizes = [8, 8], strides = [1, 1]} : vector<16x32xf32> to vector<8x8xf32>
    %191 = vector.extract_strided_slice %26 {offsets = [0, 16], sizes = [16, 8], strides = [1, 1]} : vector<32x32xf32> to vector<16x8xf32>
    %192 = vector.extract_strided_slice %27 {offsets = [0, 16], sizes = [16, 8], strides = [1, 1]} : vector<32x32xf32> to vector<16x8xf32>
    %cst_42 = arith.constant dense<0.000000e+00> : vector<8x16xf32>
    %193 = tpu.matmul %190, %191, %cst_42 {dimension_numbers = #tpu.dot_dimension_numbers<[1], [1], [0], [0], [0, 0, 1, 0], [], []>} : vector<8x8xf32>, vector<16x8xf32>, vector<8x16xf32> -> vector<8x16xf32>
    %cst_43 = arith.constant 0.000000e+00 : f32
    %194 = vector.broadcast %cst_43 : f32 to vector<8x16xf32>
    %195 = arith.cmpf oeq, %193, %194 : vector<8x16xf32>
    %cst_44 = arith.constant -1.000000e+06 : f32
    %196 = vector.broadcast %cst_44 : f32 to vector<8x16xf32>
    %197 = arith.select %195, %196, %193 : vector<8x16xi1>, vector<8x16xf32>
    %198 = vector.extract_strided_slice %35 {offsets = [0, 16], sizes = [8, 8], strides = [1, 1]} : vector<16x32xf32> to vector<8x8xf32>
    %cst_45 = arith.constant 0.000000e+00 : f32
    %199 = vector.broadcast %cst_45 : f32 to vector<8x16xf32>
    %c0_i32_46 = arith.constant 0 : i32
    %200 = vector.broadcast %c0_i32_46 : i32 to vector<8x16xi32>
    %201 = arith.cmpi eq, %38, %200 : vector<8x16xi32>
    %202 = vector.extract_strided_slice %198 {offsets = [0, 0], sizes = [8, 1], strides = [1, 1]} : vector<8x8xf32> to vector<8x1xf32>
    %203 = vector.shape_cast %202 : vector<8x1xf32> to vector<8x1xf32>
    %204 = vector.broadcast %203 : vector<8x1xf32> to vector<8x16xf32>
    %205 = arith.select %201, %204, %199 : vector<8x16xi1>, vector<8x16xf32>
    %c1_i32_47 = arith.constant 1 : i32
    %206 = vector.broadcast %c1_i32_47 : i32 to vector<8x16xi32>
    %207 = arith.cmpi eq, %38, %206 : vector<8x16xi32>
    %208 = vector.extract_strided_slice %198 {offsets = [0, 1], sizes = [8, 1], strides = [1, 1]} : vector<8x8xf32> to vector<8x1xf32>
    %209 = vector.shape_cast %208 : vector<8x1xf32> to vector<8x1xf32>
    %210 = vector.broadcast %209 : vector<8x1xf32> to vector<8x16xf32>
    %211 = arith.select %207, %210, %205 : vector<8x16xi1>, vector<8x16xf32>
    %c2_i32_48 = arith.constant 2 : i32
    %212 = vector.broadcast %c2_i32_48 : i32 to vector<8x16xi32>
    %213 = arith.cmpi eq, %38, %212 : vector<8x16xi32>
    %214 = vector.extract_strided_slice %198 {offsets = [0, 2], sizes = [8, 1], strides = [1, 1]} : vector<8x8xf32> to vector<8x1xf32>
    %215 = vector.shape_cast %214 : vector<8x1xf32> to vector<8x1xf32>
    %216 = vector.broadcast %215 : vector<8x1xf32> to vector<8x16xf32>
    %217 = arith.select %213, %216, %211 : vector<8x16xi1>, vector<8x16xf32>
    %c3_i32_49 = arith.constant 3 : i32
    %218 = vector.broadcast %c3_i32_49 : i32 to vector<8x16xi32>
    %219 = arith.cmpi eq, %38, %218 : vector<8x16xi32>
    %220 = vector.extract_strided_slice %198 {offsets = [0, 3], sizes = [8, 1], strides = [1, 1]} : vector<8x8xf32> to vector<8x1xf32>
    %221 = vector.shape_cast %220 : vector<8x1xf32> to vector<8x1xf32>
    %222 = vector.broadcast %221 : vector<8x1xf32> to vector<8x16xf32>
    %223 = arith.select %219, %222, %217 : vector<8x16xi1>, vector<8x16xf32>
    %c4_i32_50 = arith.constant 4 : i32
    %224 = vector.broadcast %c4_i32_50 : i32 to vector<8x16xi32>
    %225 = arith.cmpi eq, %38, %224 : vector<8x16xi32>
    %226 = vector.extract_strided_slice %198 {offsets = [0, 4], sizes = [8, 1], strides = [1, 1]} : vector<8x8xf32> to vector<8x1xf32>
    %227 = vector.shape_cast %226 : vector<8x1xf32> to vector<8x1xf32>
    %228 = vector.broadcast %227 : vector<8x1xf32> to vector<8x16xf32>
    %229 = arith.select %225, %228, %223 : vector<8x16xi1>, vector<8x16xf32>
    %c5_i32_51 = arith.constant 5 : i32
    %230 = vector.broadcast %c5_i32_51 : i32 to vector<8x16xi32>
    %231 = arith.cmpi eq, %38, %230 : vector<8x16xi32>
    %232 = vector.extract_strided_slice %198 {offsets = [0, 5], sizes = [8, 1], strides = [1, 1]} : vector<8x8xf32> to vector<8x1xf32>
    %233 = vector.shape_cast %232 : vector<8x1xf32> to vector<8x1xf32>
    %234 = vector.broadcast %233 : vector<8x1xf32> to vector<8x16xf32>
    %235 = arith.select %231, %234, %229 : vector<8x16xi1>, vector<8x16xf32>
    %c6_i32_52 = arith.constant 6 : i32
    %236 = vector.broadcast %c6_i32_52 : i32 to vector<8x16xi32>
    %237 = arith.cmpi eq, %38, %236 : vector<8x16xi32>
    %238 = vector.extract_strided_slice %198 {offsets = [0, 6], sizes = [8, 1], strides = [1, 1]} : vector<8x8xf32> to vector<8x1xf32>
    %239 = vector.shape_cast %238 : vector<8x1xf32> to vector<8x1xf32>
    %240 = vector.broadcast %239 : vector<8x1xf32> to vector<8x16xf32>
    %241 = arith.select %237, %240, %235 : vector<8x16xi1>, vector<8x16xf32>
    %c7_i32_53 = arith.constant 7 : i32
    %242 = vector.broadcast %c7_i32_53 : i32 to vector<8x16xi32>
    %243 = arith.cmpi eq, %38, %242 : vector<8x16xi32>
    %244 = vector.extract_strided_slice %198 {offsets = [0, 7], sizes = [8, 1], strides = [1, 1]} : vector<8x8xf32> to vector<8x1xf32>
    %245 = vector.shape_cast %244 : vector<8x1xf32> to vector<8x1xf32>
    %246 = vector.broadcast %245 : vector<8x1xf32> to vector<8x16xf32>
    %247 = arith.select %243, %246, %241 : vector<8x16xi1>, vector<8x16xf32>
    %248 = arith.addf %197, %247 : vector<8x16xf32>
    %cst_54 = arith.constant 0.353553385 : f32
    %249 = vector.broadcast %cst_54 : f32 to vector<8x16xf32>
    %250 = arith.mulf %248, %249 : vector<8x16xf32>
    %cst_55 = arith.constant -1.000000e+30 : f32
    %251 = vector.broadcast %cst_55 : f32 to vector<8x16xf32>
    %252 = arith.select %43, %250, %251 : vector<8x16xi1>, vector<8x16xf32>
    %cst_56 = arith.constant dense<0xFF800000> : vector<8xf32>
    %253 = vector.multi_reduction <maximumf>, %252, %cst_56 [1] : vector<8x16xf32> to vector<8xf32>
    %254 = vector.shape_cast %253 : vector<8xf32> to vector<8x1xf32>
    %255 = vector.broadcast %254 : vector<8x1xf32> to vector<8x16xf32>
    %256 = arith.subf %252, %255 : vector<8x16xf32>
    %257 = math.exp %256 : vector<8x16xf32>
    %cst_57 = arith.constant dense<0.000000e+00> : vector<8xf32>
    %258 = vector.multi_reduction <add>, %257, %cst_57 [1] : vector<8x16xf32> to vector<8xf32>
    %259 = vector.shape_cast %258 : vector<8xf32> to vector<8x1xf32>
    %260 = vector.broadcast %259 : vector<8x1xf32> to vector<8x16xf32>
    %261 = arith.divf %257, %260 : vector<8x16xf32>
    %cst_58 = arith.constant dense<0.000000e+00> : vector<8x8xf32>
    %262 = tpu.matmul %261, %192, %cst_58 {dimension_numbers = #tpu.dot_dimension_numbers<[1], [0], [0], [1], [0, 0, 1, 1], [], []>} : vector<8x16xf32>, vector<16x8xf32>, vector<8x8xf32> -> vector<8x8xf32>
    %263 = vector.extract_strided_slice %30 {offsets = [0, 24], sizes = [8, 8], strides = [1, 1]} : vector<16x32xf32> to vector<8x8xf32>
    %264 = vector.extract_strided_slice %26 {offsets = [0, 24], sizes = [16, 8], strides = [1, 1]} : vector<32x32xf32> to vector<16x8xf32>
    %265 = vector.extract_strided_slice %27 {offsets = [0, 24], sizes = [16, 8], strides = [1, 1]} : vector<32x32xf32> to vector<16x8xf32>
    %cst_59 = arith.constant dense<0.000000e+00> : vector<8x16xf32>
    %266 = tpu.matmul %263, %264, %cst_59 {dimension_numbers = #tpu.dot_dimension_numbers<[1], [1], [0], [0], [0, 0, 1, 0], [], []>} : vector<8x8xf32>, vector<16x8xf32>, vector<8x16xf32> -> vector<8x16xf32>
    %cst_60 = arith.constant 0.000000e+00 : f32
    %267 = vector.broadcast %cst_60 : f32 to vector<8x16xf32>
    %268 = arith.cmpf oeq, %266, %267 : vector<8x16xf32>
    %cst_61 = arith.constant -1.000000e+06 : f32
    %269 = vector.broadcast %cst_61 : f32 to vector<8x16xf32>
    %270 = arith.select %268, %269, %266 : vector<8x16xi1>, vector<8x16xf32>
    %271 = vector.extract_strided_slice %35 {offsets = [0, 24], sizes = [8, 8], strides = [1, 1]} : vector<16x32xf32> to vector<8x8xf32>
    %cst_62 = arith.constant 0.000000e+00 : f32
    %272 = vector.broadcast %cst_62 : f32 to vector<8x16xf32>
    %c0_i32_63 = arith.constant 0 : i32
    %273 = vector.broadcast %c0_i32_63 : i32 to vector<8x16xi32>
    %274 = arith.cmpi eq, %38, %273 : vector<8x16xi32>
    %275 = vector.extract_strided_slice %271 {offsets = [0, 0], sizes = [8, 1], strides = [1, 1]} : vector<8x8xf32> to vector<8x1xf32>
    %276 = vector.shape_cast %275 : vector<8x1xf32> to vector<8x1xf32>
    %277 = vector.broadcast %276 : vector<8x1xf32> to vector<8x16xf32>
    %278 = arith.select %274, %277, %272 : vector<8x16xi1>, vector<8x16xf32>
    %c1_i32_64 = arith.constant 1 : i32
    %279 = vector.broadcast %c1_i32_64 : i32 to vector<8x16xi32>
    %280 = arith.cmpi eq, %38, %279 : vector<8x16xi32>
    %281 = vector.extract_strided_slice %271 {offsets = [0, 1], sizes = [8, 1], strides = [1, 1]} : vector<8x8xf32> to vector<8x1xf32>
    %282 = vector.shape_cast %281 : vector<8x1xf32> to vector<8x1xf32>
    %283 = vector.broadcast %282 : vector<8x1xf32> to vector<8x16xf32>
    %284 = arith.select %280, %283, %278 : vector<8x16xi1>, vector<8x16xf32>
    %c2_i32_65 = arith.constant 2 : i32
    %285 = vector.broadcast %c2_i32_65 : i32 to vector<8x16xi32>
    %286 = arith.cmpi eq, %38, %285 : vector<8x16xi32>
    %287 = vector.extract_strided_slice %271 {offsets = [0, 2], sizes = [8, 1], strides = [1, 1]} : vector<8x8xf32> to vector<8x1xf32>
    %288 = vector.shape_cast %287 : vector<8x1xf32> to vector<8x1xf32>
    %289 = vector.broadcast %288 : vector<8x1xf32> to vector<8x16xf32>
    %290 = arith.select %286, %289, %284 : vector<8x16xi1>, vector<8x16xf32>
    %c3_i32_66 = arith.constant 3 : i32
    %291 = vector.broadcast %c3_i32_66 : i32 to vector<8x16xi32>
    %292 = arith.cmpi eq, %38, %291 : vector<8x16xi32>
    %293 = vector.extract_strided_slice %271 {offsets = [0, 3], sizes = [8, 1], strides = [1, 1]} : vector<8x8xf32> to vector<8x1xf32>
    %294 = vector.shape_cast %293 : vector<8x1xf32> to vector<8x1xf32>
    %295 = vector.broadcast %294 : vector<8x1xf32> to vector<8x16xf32>
    %296 = arith.select %292, %295, %290 : vector<8x16xi1>, vector<8x16xf32>
    %c4_i32_67 = arith.constant 4 : i32
    %297 = vector.broadcast %c4_i32_67 : i32 to vector<8x16xi32>
    %298 = arith.cmpi eq, %38, %297 : vector<8x16xi32>
    %299 = vector.extract_strided_slice %271 {offsets = [0, 4], sizes = [8, 1], strides = [1, 1]} : vector<8x8xf32> to vector<8x1xf32>
    %300 = vector.shape_cast %299 : vector<8x1xf32> to vector<8x1xf32>
    %301 = vector.broadcast %300 : vector<8x1xf32> to vector<8x16xf32>
    %302 = arith.select %298, %301, %296 : vector<8x16xi1>, vector<8x16xf32>
    %c5_i32_68 = arith.constant 5 : i32
    %303 = vector.broadcast %c5_i32_68 : i32 to vector<8x16xi32>
    %304 = arith.cmpi eq, %38, %303 : vector<8x16xi32>
    %305 = vector.extract_strided_slice %271 {offsets = [0, 5], sizes = [8, 1], strides = [1, 1]} : vector<8x8xf32> to vector<8x1xf32>
    %306 = vector.shape_cast %305 : vector<8x1xf32> to vector<8x1xf32>
    %307 = vector.broadcast %306 : vector<8x1xf32> to vector<8x16xf32>
    %308 = arith.select %304, %307, %302 : vector<8x16xi1>, vector<8x16xf32>
    %c6_i32_69 = arith.constant 6 : i32
    %309 = vector.broadcast %c6_i32_69 : i32 to vector<8x16xi32>
    %310 = arith.cmpi eq, %38, %309 : vector<8x16xi32>
    %311 = vector.extract_strided_slice %271 {offsets = [0, 6], sizes = [8, 1], strides = [1, 1]} : vector<8x8xf32> to vector<8x1xf32>
    %312 = vector.shape_cast %311 : vector<8x1xf32> to vector<8x1xf32>
    %313 = vector.broadcast %312 : vector<8x1xf32> to vector<8x16xf32>
    %314 = arith.select %310, %313, %308 : vector<8x16xi1>, vector<8x16xf32>
    %c7_i32_70 = arith.constant 7 : i32
    %315 = vector.broadcast %c7_i32_70 : i32 to vector<8x16xi32>
    %316 = arith.cmpi eq, %38, %315 : vector<8x16xi32>
    %317 = vector.extract_strided_slice %271 {offsets = [0, 7], sizes = [8, 1], strides = [1, 1]} : vector<8x8xf32> to vector<8x1xf32>
    %318 = vector.shape_cast %317 : vector<8x1xf32> to vector<8x1xf32>
    %319 = vector.broadcast %318 : vector<8x1xf32> to vector<8x16xf32>
    %320 = arith.select %316, %319, %314 : vector<8x16xi1>, vector<8x16xf32>
    %321 = arith.addf %270, %320 : vector<8x16xf32>
    %cst_71 = arith.constant 0.353553385 : f32
    %322 = vector.broadcast %cst_71 : f32 to vector<8x16xf32>
    %323 = arith.mulf %321, %322 : vector<8x16xf32>
    %cst_72 = arith.constant -1.000000e+30 : f32
    %324 = vector.broadcast %cst_72 : f32 to vector<8x16xf32>
    %325 = arith.select %43, %323, %324 : vector<8x16xi1>, vector<8x16xf32>
    %cst_73 = arith.constant dense<0xFF800000> : vector<8xf32>
    %326 = vector.multi_reduction <maximumf>, %325, %cst_73 [1] : vector<8x16xf32> to vector<8xf32>
    %327 = vector.shape_cast %326 : vector<8xf32> to vector<8x1xf32>
    %328 = vector.broadcast %327 : vector<8x1xf32> to vector<8x16xf32>
    %329 = arith.subf %325, %328 : vector<8x16xf32>
    %330 = math.exp %329 : vector<8x16xf32>
    %cst_74 = arith.constant dense<0.000000e+00> : vector<8xf32>
    %331 = vector.multi_reduction <add>, %330, %cst_74 [1] : vector<8x16xf32> to vector<8xf32>
    %332 = vector.shape_cast %331 : vector<8xf32> to vector<8x1xf32>
    %333 = vector.broadcast %332 : vector<8x1xf32> to vector<8x16xf32>
    %334 = arith.divf %330, %333 : vector<8x16xf32>
    %cst_75 = arith.constant dense<0.000000e+00> : vector<8x8xf32>
    %335 = tpu.matmul %334, %265, %cst_75 {dimension_numbers = #tpu.dot_dimension_numbers<[1], [0], [0], [1], [0, 0, 1, 1], [], []>} : vector<8x16xf32>, vector<16x8xf32>, vector<8x8xf32> -> vector<8x8xf32>
    %336 = tpu.concatenate %116, %189, %262, %335 in 1 : vector<8x8xf32>, vector<8x8xf32>, vector<8x8xf32>, vector<8x8xf32> -> vector<8x32xf32>
    %337 = vector.extract_strided_slice %30 {offsets = [8, 0], sizes = [8, 8], strides = [1, 1]} : vector<16x32xf32> to vector<8x8xf32>
    %338 = vector.extract_strided_slice %26 {offsets = [16, 0], sizes = [16, 8], strides = [1, 1]} : vector<32x32xf32> to vector<16x8xf32>
    %339 = vector.extract_strided_slice %27 {offsets = [16, 0], sizes = [16, 8], strides = [1, 1]} : vector<32x32xf32> to vector<16x8xf32>
    %cst_76 = arith.constant dense<0.000000e+00> : vector<8x16xf32>
    %340 = tpu.matmul %337, %338, %cst_76 {dimension_numbers = #tpu.dot_dimension_numbers<[1], [1], [0], [0], [0, 0, 1, 0], [], []>} : vector<8x8xf32>, vector<16x8xf32>, vector<8x16xf32> -> vector<8x16xf32>
    %cst_77 = arith.constant 0.000000e+00 : f32
    %341 = vector.broadcast %cst_77 : f32 to vector<8x16xf32>
    %342 = arith.cmpf oeq, %340, %341 : vector<8x16xf32>
    %cst_78 = arith.constant -1.000000e+06 : f32
    %343 = vector.broadcast %cst_78 : f32 to vector<8x16xf32>
    %344 = arith.select %342, %343, %340 : vector<8x16xi1>, vector<8x16xf32>
    %345 = vector.extract_strided_slice %35 {offsets = [8, 0], sizes = [8, 8], strides = [1, 1]} : vector<16x32xf32> to vector<8x8xf32>
    %cst_79 = arith.constant 0.000000e+00 : f32
    %346 = vector.broadcast %cst_79 : f32 to vector<8x16xf32>
    %c0_i32_80 = arith.constant 0 : i32
    %347 = vector.broadcast %c0_i32_80 : i32 to vector<8x16xi32>
    %348 = arith.cmpi eq, %38, %347 : vector<8x16xi32>
    %349 = vector.extract_strided_slice %345 {offsets = [0, 0], sizes = [8, 1], strides = [1, 1]} : vector<8x8xf32> to vector<8x1xf32>
    %350 = vector.shape_cast %349 : vector<8x1xf32> to vector<8x1xf32>
    %351 = vector.broadcast %350 : vector<8x1xf32> to vector<8x16xf32>
    %352 = arith.select %348, %351, %346 : vector<8x16xi1>, vector<8x16xf32>
    %c1_i32_81 = arith.constant 1 : i32
    %353 = vector.broadcast %c1_i32_81 : i32 to vector<8x16xi32>
    %354 = arith.cmpi eq, %38, %353 : vector<8x16xi32>
    %355 = vector.extract_strided_slice %345 {offsets = [0, 1], sizes = [8, 1], strides = [1, 1]} : vector<8x8xf32> to vector<8x1xf32>
    %356 = vector.shape_cast %355 : vector<8x1xf32> to vector<8x1xf32>
    %357 = vector.broadcast %356 : vector<8x1xf32> to vector<8x16xf32>
    %358 = arith.select %354, %357, %352 : vector<8x16xi1>, vector<8x16xf32>
    %c2_i32_82 = arith.constant 2 : i32
    %359 = vector.broadcast %c2_i32_82 : i32 to vector<8x16xi32>
    %360 = arith.cmpi eq, %38, %359 : vector<8x16xi32>
    %361 = vector.extract_strided_slice %345 {offsets = [0, 2], sizes = [8, 1], strides = [1, 1]} : vector<8x8xf32> to vector<8x1xf32>
    %362 = vector.shape_cast %361 : vector<8x1xf32> to vector<8x1xf32>
    %363 = vector.broadcast %362 : vector<8x1xf32> to vector<8x16xf32>
    %364 = arith.select %360, %363, %358 : vector<8x16xi1>, vector<8x16xf32>
    %c3_i32_83 = arith.constant 3 : i32
    %365 = vector.broadcast %c3_i32_83 : i32 to vector<8x16xi32>
    %366 = arith.cmpi eq, %38, %365 : vector<8x16xi32>
    %367 = vector.extract_strided_slice %345 {offsets = [0, 3], sizes = [8, 1], strides = [1, 1]} : vector<8x8xf32> to vector<8x1xf32>
    %368 = vector.shape_cast %367 : vector<8x1xf32> to vector<8x1xf32>
    %369 = vector.broadcast %368 : vector<8x1xf32> to vector<8x16xf32>
    %370 = arith.select %366, %369, %364 : vector<8x16xi1>, vector<8x16xf32>
    %c4_i32_84 = arith.constant 4 : i32
    %371 = vector.broadcast %c4_i32_84 : i32 to vector<8x16xi32>
    %372 = arith.cmpi eq, %38, %371 : vector<8x16xi32>
    %373 = vector.extract_strided_slice %345 {offsets = [0, 4], sizes = [8, 1], strides = [1, 1]} : vector<8x8xf32> to vector<8x1xf32>
    %374 = vector.shape_cast %373 : vector<8x1xf32> to vector<8x1xf32>
    %375 = vector.broadcast %374 : vector<8x1xf32> to vector<8x16xf32>
    %376 = arith.select %372, %375, %370 : vector<8x16xi1>, vector<8x16xf32>
    %c5_i32_85 = arith.constant 5 : i32
    %377 = vector.broadcast %c5_i32_85 : i32 to vector<8x16xi32>
    %378 = arith.cmpi eq, %38, %377 : vector<8x16xi32>
    %379 = vector.extract_strided_slice %345 {offsets = [0, 5], sizes = [8, 1], strides = [1, 1]} : vector<8x8xf32> to vector<8x1xf32>
    %380 = vector.shape_cast %379 : vector<8x1xf32> to vector<8x1xf32>
    %381 = vector.broadcast %380 : vector<8x1xf32> to vector<8x16xf32>
    %382 = arith.select %378, %381, %376 : vector<8x16xi1>, vector<8x16xf32>
    %c6_i32_86 = arith.constant 6 : i32
    %383 = vector.broadcast %c6_i32_86 : i32 to vector<8x16xi32>
    %384 = arith.cmpi eq, %38, %383 : vector<8x16xi32>
    %385 = vector.extract_strided_slice %345 {offsets = [0, 6], sizes = [8, 1], strides = [1, 1]} : vector<8x8xf32> to vector<8x1xf32>
    %386 = vector.shape_cast %385 : vector<8x1xf32> to vector<8x1xf32>
    %387 = vector.broadcast %386 : vector<8x1xf32> to vector<8x16xf32>
    %388 = arith.select %384, %387, %382 : vector<8x16xi1>, vector<8x16xf32>
    %c7_i32_87 = arith.constant 7 : i32
    %389 = vector.broadcast %c7_i32_87 : i32 to vector<8x16xi32>
    %390 = arith.cmpi eq, %38, %389 : vector<8x16xi32>
    %391 = vector.extract_strided_slice %345 {offsets = [0, 7], sizes = [8, 1], strides = [1, 1]} : vector<8x8xf32> to vector<8x1xf32>
    %392 = vector.shape_cast %391 : vector<8x1xf32> to vector<8x1xf32>
    %393 = vector.broadcast %392 : vector<8x1xf32> to vector<8x16xf32>
    %394 = arith.select %390, %393, %388 : vector<8x16xi1>, vector<8x16xf32>
    %395 = arith.addf %344, %394 : vector<8x16xf32>
    %cst_88 = arith.constant 0.353553385 : f32
    %396 = vector.broadcast %cst_88 : f32 to vector<8x16xf32>
    %397 = arith.mulf %395, %396 : vector<8x16xf32>
    %cst_89 = arith.constant -1.000000e+30 : f32
    %398 = vector.broadcast %cst_89 : f32 to vector<8x16xf32>
    %399 = arith.select %43, %397, %398 : vector<8x16xi1>, vector<8x16xf32>
    %cst_90 = arith.constant dense<0xFF800000> : vector<8xf32>
    %400 = vector.multi_reduction <maximumf>, %399, %cst_90 [1] : vector<8x16xf32> to vector<8xf32>
    %401 = vector.shape_cast %400 : vector<8xf32> to vector<8x1xf32>
    %402 = vector.broadcast %401 : vector<8x1xf32> to vector<8x16xf32>
    %403 = arith.subf %399, %402 : vector<8x16xf32>
    %404 = math.exp %403 : vector<8x16xf32>
    %cst_91 = arith.constant dense<0.000000e+00> : vector<8xf32>
    %405 = vector.multi_reduction <add>, %404, %cst_91 [1] : vector<8x16xf32> to vector<8xf32>
    %406 = vector.shape_cast %405 : vector<8xf32> to vector<8x1xf32>
    %407 = vector.broadcast %406 : vector<8x1xf32> to vector<8x16xf32>
    %408 = arith.divf %404, %407 : vector<8x16xf32>
    %cst_92 = arith.constant dense<0.000000e+00> : vector<8x8xf32>
    %409 = tpu.matmul %408, %339, %cst_92 {dimension_numbers = #tpu.dot_dimension_numbers<[1], [0], [0], [1], [0, 0, 1, 1], [], []>} : vector<8x16xf32>, vector<16x8xf32>, vector<8x8xf32> -> vector<8x8xf32>
    %410 = vector.extract_strided_slice %30 {offsets = [8, 8], sizes = [8, 8], strides = [1, 1]} : vector<16x32xf32> to vector<8x8xf32>
    %411 = vector.extract_strided_slice %26 {offsets = [16, 8], sizes = [16, 8], strides = [1, 1]} : vector<32x32xf32> to vector<16x8xf32>
    %412 = vector.extract_strided_slice %27 {offsets = [16, 8], sizes = [16, 8], strides = [1, 1]} : vector<32x32xf32> to vector<16x8xf32>
    %cst_93 = arith.constant dense<0.000000e+00> : vector<8x16xf32>
    %413 = tpu.matmul %410, %411, %cst_93 {dimension_numbers = #tpu.dot_dimension_numbers<[1], [1], [0], [0], [0, 0, 1, 0], [], []>} : vector<8x8xf32>, vector<16x8xf32>, vector<8x16xf32> -> vector<8x16xf32>
    %cst_94 = arith.constant 0.000000e+00 : f32
    %414 = vector.broadcast %cst_94 : f32 to vector<8x16xf32>
    %415 = arith.cmpf oeq, %413, %414 : vector<8x16xf32>
    %cst_95 = arith.constant -1.000000e+06 : f32
    %416 = vector.broadcast %cst_95 : f32 to vector<8x16xf32>
    %417 = arith.select %415, %416, %413 : vector<8x16xi1>, vector<8x16xf32>
    %418 = vector.extract_strided_slice %35 {offsets = [8, 8], sizes = [8, 8], strides = [1, 1]} : vector<16x32xf32> to vector<8x8xf32>
    %cst_96 = arith.constant 0.000000e+00 : f32
    %419 = vector.broadcast %cst_96 : f32 to vector<8x16xf32>
    %c0_i32_97 = arith.constant 0 : i32
    %420 = vector.broadcast %c0_i32_97 : i32 to vector<8x16xi32>
    %421 = arith.cmpi eq, %38, %420 : vector<8x16xi32>
    %422 = vector.extract_strided_slice %418 {offsets = [0, 0], sizes = [8, 1], strides = [1, 1]} : vector<8x8xf32> to vector<8x1xf32>
    %423 = vector.shape_cast %422 : vector<8x1xf32> to vector<8x1xf32>
    %424 = vector.broadcast %423 : vector<8x1xf32> to vector<8x16xf32>
    %425 = arith.select %421, %424, %419 : vector<8x16xi1>, vector<8x16xf32>
    %c1_i32_98 = arith.constant 1 : i32
    %426 = vector.broadcast %c1_i32_98 : i32 to vector<8x16xi32>
    %427 = arith.cmpi eq, %38, %426 : vector<8x16xi32>
    %428 = vector.extract_strided_slice %418 {offsets = [0, 1], sizes = [8, 1], strides = [1, 1]} : vector<8x8xf32> to vector<8x1xf32>
    %429 = vector.shape_cast %428 : vector<8x1xf32> to vector<8x1xf32>
    %430 = vector.broadcast %429 : vector<8x1xf32> to vector<8x16xf32>
    %431 = arith.select %427, %430, %425 : vector<8x16xi1>, vector<8x16xf32>
    %c2_i32_99 = arith.constant 2 : i32
    %432 = vector.broadcast %c2_i32_99 : i32 to vector<8x16xi32>
    %433 = arith.cmpi eq, %38, %432 : vector<8x16xi32>
    %434 = vector.extract_strided_slice %418 {offsets = [0, 2], sizes = [8, 1], strides = [1, 1]} : vector<8x8xf32> to vector<8x1xf32>
    %435 = vector.shape_cast %434 : vector<8x1xf32> to vector<8x1xf32>
    %436 = vector.broadcast %435 : vector<8x1xf32> to vector<8x16xf32>
    %437 = arith.select %433, %436, %431 : vector<8x16xi1>, vector<8x16xf32>
    %c3_i32_100 = arith.constant 3 : i32
    %438 = vector.broadcast %c3_i32_100 : i32 to vector<8x16xi32>
    %439 = arith.cmpi eq, %38, %438 : vector<8x16xi32>
    %440 = vector.extract_strided_slice %418 {offsets = [0, 3], sizes = [8, 1], strides = [1, 1]} : vector<8x8xf32> to vector<8x1xf32>
    %441 = vector.shape_cast %440 : vector<8x1xf32> to vector<8x1xf32>
    %442 = vector.broadcast %441 : vector<8x1xf32> to vector<8x16xf32>
    %443 = arith.select %439, %442, %437 : vector<8x16xi1>, vector<8x16xf32>
    %c4_i32_101 = arith.constant 4 : i32
    %444 = vector.broadcast %c4_i32_101 : i32 to vector<8x16xi32>
    %445 = arith.cmpi eq, %38, %444 : vector<8x16xi32>
    %446 = vector.extract_strided_slice %418 {offsets = [0, 4], sizes = [8, 1], strides = [1, 1]} : vector<8x8xf32> to vector<8x1xf32>
    %447 = vector.shape_cast %446 : vector<8x1xf32> to vector<8x1xf32>
    %448 = vector.broadcast %447 : vector<8x1xf32> to vector<8x16xf32>
    %449 = arith.select %445, %448, %443 : vector<8x16xi1>, vector<8x16xf32>
    %c5_i32_102 = arith.constant 5 : i32
    %450 = vector.broadcast %c5_i32_102 : i32 to vector<8x16xi32>
    %451 = arith.cmpi eq, %38, %450 : vector<8x16xi32>
    %452 = vector.extract_strided_slice %418 {offsets = [0, 5], sizes = [8, 1], strides = [1, 1]} : vector<8x8xf32> to vector<8x1xf32>
    %453 = vector.shape_cast %452 : vector<8x1xf32> to vector<8x1xf32>
    %454 = vector.broadcast %453 : vector<8x1xf32> to vector<8x16xf32>
    %455 = arith.select %451, %454, %449 : vector<8x16xi1>, vector<8x16xf32>
    %c6_i32_103 = arith.constant 6 : i32
    %456 = vector.broadcast %c6_i32_103 : i32 to vector<8x16xi32>
    %457 = arith.cmpi eq, %38, %456 : vector<8x16xi32>
    %458 = vector.extract_strided_slice %418 {offsets = [0, 6], sizes = [8, 1], strides = [1, 1]} : vector<8x8xf32> to vector<8x1xf32>
    %459 = vector.shape_cast %458 : vector<8x1xf32> to vector<8x1xf32>
    %460 = vector.broadcast %459 : vector<8x1xf32> to vector<8x16xf32>
    %461 = arith.select %457, %460, %455 : vector<8x16xi1>, vector<8x16xf32>
    %c7_i32_104 = arith.constant 7 : i32
    %462 = vector.broadcast %c7_i32_104 : i32 to vector<8x16xi32>
    %463 = arith.cmpi eq, %38, %462 : vector<8x16xi32>
    %464 = vector.extract_strided_slice %418 {offsets = [0, 7], sizes = [8, 1], strides = [1, 1]} : vector<8x8xf32> to vector<8x1xf32>
    %465 = vector.shape_cast %464 : vector<8x1xf32> to vector<8x1xf32>
    %466 = vector.broadcast %465 : vector<8x1xf32> to vector<8x16xf32>
    %467 = arith.select %463, %466, %461 : vector<8x16xi1>, vector<8x16xf32>
    %468 = arith.addf %417, %467 : vector<8x16xf32>
    %cst_105 = arith.constant 0.353553385 : f32
    %469 = vector.broadcast %cst_105 : f32 to vector<8x16xf32>
    %470 = arith.mulf %468, %469 : vector<8x16xf32>
    %cst_106 = arith.constant -1.000000e+30 : f32
    %471 = vector.broadcast %cst_106 : f32 to vector<8x16xf32>
    %472 = arith.select %43, %470, %471 : vector<8x16xi1>, vector<8x16xf32>
    %cst_107 = arith.constant dense<0xFF800000> : vector<8xf32>
    %473 = vector.multi_reduction <maximumf>, %472, %cst_107 [1] : vector<8x16xf32> to vector<8xf32>
    %474 = vector.shape_cast %473 : vector<8xf32> to vector<8x1xf32>
    %475 = vector.broadcast %474 : vector<8x1xf32> to vector<8x16xf32>
    %476 = arith.subf %472, %475 : vector<8x16xf32>
    %477 = math.exp %476 : vector<8x16xf32>
    %cst_108 = arith.constant dense<0.000000e+00> : vector<8xf32>
    %478 = vector.multi_reduction <add>, %477, %cst_108 [1] : vector<8x16xf32> to vector<8xf32>
    %479 = vector.shape_cast %478 : vector<8xf32> to vector<8x1xf32>
    %480 = vector.broadcast %479 : vector<8x1xf32> to vector<8x16xf32>
    %481 = arith.divf %477, %480 : vector<8x16xf32>
    %cst_109 = arith.constant dense<0.000000e+00> : vector<8x8xf32>
    %482 = tpu.matmul %481, %412, %cst_109 {dimension_numbers = #tpu.dot_dimension_numbers<[1], [0], [0], [1], [0, 0, 1, 1], [], []>} : vector<8x16xf32>, vector<16x8xf32>, vector<8x8xf32> -> vector<8x8xf32>
    %483 = vector.extract_strided_slice %30 {offsets = [8, 16], sizes = [8, 8], strides = [1, 1]} : vector<16x32xf32> to vector<8x8xf32>
    %484 = vector.extract_strided_slice %26 {offsets = [16, 16], sizes = [16, 8], strides = [1, 1]} : vector<32x32xf32> to vector<16x8xf32>
    %485 = vector.extract_strided_slice %27 {offsets = [16, 16], sizes = [16, 8], strides = [1, 1]} : vector<32x32xf32> to vector<16x8xf32>
    %cst_110 = arith.constant dense<0.000000e+00> : vector<8x16xf32>
    %486 = tpu.matmul %483, %484, %cst_110 {dimension_numbers = #tpu.dot_dimension_numbers<[1], [1], [0], [0], [0, 0, 1, 0], [], []>} : vector<8x8xf32>, vector<16x8xf32>, vector<8x16xf32> -> vector<8x16xf32>
    %cst_111 = arith.constant 0.000000e+00 : f32
    %487 = vector.broadcast %cst_111 : f32 to vector<8x16xf32>
    %488 = arith.cmpf oeq, %486, %487 : vector<8x16xf32>
    %cst_112 = arith.constant -1.000000e+06 : f32
    %489 = vector.broadcast %cst_112 : f32 to vector<8x16xf32>
    %490 = arith.select %488, %489, %486 : vector<8x16xi1>, vector<8x16xf32>
    %491 = vector.extract_strided_slice %35 {offsets = [8, 16], sizes = [8, 8], strides = [1, 1]} : vector<16x32xf32> to vector<8x8xf32>
    %cst_113 = arith.constant 0.000000e+00 : f32
    %492 = vector.broadcast %cst_113 : f32 to vector<8x16xf32>
    %c0_i32_114 = arith.constant 0 : i32
    %493 = vector.broadcast %c0_i32_114 : i32 to vector<8x16xi32>
    %494 = arith.cmpi eq, %38, %493 : vector<8x16xi32>
    %495 = vector.extract_strided_slice %491 {offsets = [0, 0], sizes = [8, 1], strides = [1, 1]} : vector<8x8xf32> to vector<8x1xf32>
    %496 = vector.shape_cast %495 : vector<8x1xf32> to vector<8x1xf32>
    %497 = vector.broadcast %496 : vector<8x1xf32> to vector<8x16xf32>
    %498 = arith.select %494, %497, %492 : vector<8x16xi1>, vector<8x16xf32>
    %c1_i32_115 = arith.constant 1 : i32
    %499 = vector.broadcast %c1_i32_115 : i32 to vector<8x16xi32>
    %500 = arith.cmpi eq, %38, %499 : vector<8x16xi32>
    %501 = vector.extract_strided_slice %491 {offsets = [0, 1], sizes = [8, 1], strides = [1, 1]} : vector<8x8xf32> to vector<8x1xf32>
    %502 = vector.shape_cast %501 : vector<8x1xf32> to vector<8x1xf32>
    %503 = vector.broadcast %502 : vector<8x1xf32> to vector<8x16xf32>
    %504 = arith.select %500, %503, %498 : vector<8x16xi1>, vector<8x16xf32>
    %c2_i32_116 = arith.constant 2 : i32
    %505 = vector.broadcast %c2_i32_116 : i32 to vector<8x16xi32>
    %506 = arith.cmpi eq, %38, %505 : vector<8x16xi32>
    %507 = vector.extract_strided_slice %491 {offsets = [0, 2], sizes = [8, 1], strides = [1, 1]} : vector<8x8xf32> to vector<8x1xf32>
    %508 = vector.shape_cast %507 : vector<8x1xf32> to vector<8x1xf32>
    %509 = vector.broadcast %508 : vector<8x1xf32> to vector<8x16xf32>
    %510 = arith.select %506, %509, %504 : vector<8x16xi1>, vector<8x16xf32>
    %c3_i32_117 = arith.constant 3 : i32
    %511 = vector.broadcast %c3_i32_117 : i32 to vector<8x16xi32>
    %512 = arith.cmpi eq, %38, %511 : vector<8x16xi32>
    %513 = vector.extract_strided_slice %491 {offsets = [0, 3], sizes = [8, 1], strides = [1, 1]} : vector<8x8xf32> to vector<8x1xf32>
    %514 = vector.shape_cast %513 : vector<8x1xf32> to vector<8x1xf32>
    %515 = vector.broadcast %514 : vector<8x1xf32> to vector<8x16xf32>
    %516 = arith.select %512, %515, %510 : vector<8x16xi1>, vector<8x16xf32>
    %c4_i32_118 = arith.constant 4 : i32
    %517 = vector.broadcast %c4_i32_118 : i32 to vector<8x16xi32>
    %518 = arith.cmpi eq, %38, %517 : vector<8x16xi32>
    %519 = vector.extract_strided_slice %491 {offsets = [0, 4], sizes = [8, 1], strides = [1, 1]} : vector<8x8xf32> to vector<8x1xf32>
    %520 = vector.shape_cast %519 : vector<8x1xf32> to vector<8x1xf32>
    %521 = vector.broadcast %520 : vector<8x1xf32> to vector<8x16xf32>
    %522 = arith.select %518, %521, %516 : vector<8x16xi1>, vector<8x16xf32>
    %c5_i32_119 = arith.constant 5 : i32
    %523 = vector.broadcast %c5_i32_119 : i32 to vector<8x16xi32>
    %524 = arith.cmpi eq, %38, %523 : vector<8x16xi32>
    %525 = vector.extract_strided_slice %491 {offsets = [0, 5], sizes = [8, 1], strides = [1, 1]} : vector<8x8xf32> to vector<8x1xf32>
    %526 = vector.shape_cast %525 : vector<8x1xf32> to vector<8x1xf32>
    %527 = vector.broadcast %526 : vector<8x1xf32> to vector<8x16xf32>
    %528 = arith.select %524, %527, %522 : vector<8x16xi1>, vector<8x16xf32>
    %c6_i32_120 = arith.constant 6 : i32
    %529 = vector.broadcast %c6_i32_120 : i32 to vector<8x16xi32>
    %530 = arith.cmpi eq, %38, %529 : vector<8x16xi32>
    %531 = vector.extract_strided_slice %491 {offsets = [0, 6], sizes = [8, 1], strides = [1, 1]} : vector<8x8xf32> to vector<8x1xf32>
    %532 = vector.shape_cast %531 : vector<8x1xf32> to vector<8x1xf32>
    %533 = vector.broadcast %532 : vector<8x1xf32> to vector<8x16xf32>
    %534 = arith.select %530, %533, %528 : vector<8x16xi1>, vector<8x16xf32>
    %c7_i32_121 = arith.constant 7 : i32
    %535 = vector.broadcast %c7_i32_121 : i32 to vector<8x16xi32>
    %536 = arith.cmpi eq, %38, %535 : vector<8x16xi32>
    %537 = vector.extract_strided_slice %491 {offsets = [0, 7], sizes = [8, 1], strides = [1, 1]} : vector<8x8xf32> to vector<8x1xf32>
    %538 = vector.shape_cast %537 : vector<8x1xf32> to vector<8x1xf32>
    %539 = vector.broadcast %538 : vector<8x1xf32> to vector<8x16xf32>
    %540 = arith.select %536, %539, %534 : vector<8x16xi1>, vector<8x16xf32>
    %541 = arith.addf %490, %540 : vector<8x16xf32>
    %cst_122 = arith.constant 0.353553385 : f32
    %542 = vector.broadcast %cst_122 : f32 to vector<8x16xf32>
    %543 = arith.mulf %541, %542 : vector<8x16xf32>
    %cst_123 = arith.constant -1.000000e+30 : f32
    %544 = vector.broadcast %cst_123 : f32 to vector<8x16xf32>
    %545 = arith.select %43, %543, %544 : vector<8x16xi1>, vector<8x16xf32>
    %cst_124 = arith.constant dense<0xFF800000> : vector<8xf32>
    %546 = vector.multi_reduction <maximumf>, %545, %cst_124 [1] : vector<8x16xf32> to vector<8xf32>
    %547 = vector.shape_cast %546 : vector<8xf32> to vector<8x1xf32>
    %548 = vector.broadcast %547 : vector<8x1xf32> to vector<8x16xf32>
    %549 = arith.subf %545, %548 : vector<8x16xf32>
    %550 = math.exp %549 : vector<8x16xf32>
    %cst_125 = arith.constant dense<0.000000e+00> : vector<8xf32>
    %551 = vector.multi_reduction <add>, %550, %cst_125 [1] : vector<8x16xf32> to vector<8xf32>
    %552 = vector.shape_cast %551 : vector<8xf32> to vector<8x1xf32>
    %553 = vector.broadcast %552 : vector<8x1xf32> to vector<8x16xf32>
    %554 = arith.divf %550, %553 : vector<8x16xf32>
    %cst_126 = arith.constant dense<0.000000e+00> : vector<8x8xf32>
    %555 = tpu.matmul %554, %485, %cst_126 {dimension_numbers = #tpu.dot_dimension_numbers<[1], [0], [0], [1], [0, 0, 1, 1], [], []>} : vector<8x16xf32>, vector<16x8xf32>, vector<8x8xf32> -> vector<8x8xf32>
    %556 = vector.extract_strided_slice %30 {offsets = [8, 24], sizes = [8, 8], strides = [1, 1]} : vector<16x32xf32> to vector<8x8xf32>
    %557 = vector.extract_strided_slice %26 {offsets = [16, 24], sizes = [16, 8], strides = [1, 1]} : vector<32x32xf32> to vector<16x8xf32>
    %558 = vector.extract_strided_slice %27 {offsets = [16, 24], sizes = [16, 8], strides = [1, 1]} : vector<32x32xf32> to vector<16x8xf32>
    %cst_127 = arith.constant dense<0.000000e+00> : vector<8x16xf32>
    %559 = tpu.matmul %556, %557, %cst_127 {dimension_numbers = #tpu.dot_dimension_numbers<[1], [1], [0], [0], [0, 0, 1, 0], [], []>} : vector<8x8xf32>, vector<16x8xf32>, vector<8x16xf32> -> vector<8x16xf32>
    %cst_128 = arith.constant 0.000000e+00 : f32
    %560 = vector.broadcast %cst_128 : f32 to vector<8x16xf32>
    %561 = arith.cmpf oeq, %559, %560 : vector<8x16xf32>
    %cst_129 = arith.constant -1.000000e+06 : f32
    %562 = vector.broadcast %cst_129 : f32 to vector<8x16xf32>
    %563 = arith.select %561, %562, %559 : vector<8x16xi1>, vector<8x16xf32>
    %564 = vector.extract_strided_slice %35 {offsets = [8, 24], sizes = [8, 8], strides = [1, 1]} : vector<16x32xf32> to vector<8x8xf32>
    %cst_130 = arith.constant 0.000000e+00 : f32
    %565 = vector.broadcast %cst_130 : f32 to vector<8x16xf32>
    %c0_i32_131 = arith.constant 0 : i32
    %566 = vector.broadcast %c0_i32_131 : i32 to vector<8x16xi32>
    %567 = arith.cmpi eq, %38, %566 : vector<8x16xi32>
    %568 = vector.extract_strided_slice %564 {offsets = [0, 0], sizes = [8, 1], strides = [1, 1]} : vector<8x8xf32> to vector<8x1xf32>
    %569 = vector.shape_cast %568 : vector<8x1xf32> to vector<8x1xf32>
    %570 = vector.broadcast %569 : vector<8x1xf32> to vector<8x16xf32>
    %571 = arith.select %567, %570, %565 : vector<8x16xi1>, vector<8x16xf32>
    %c1_i32_132 = arith.constant 1 : i32
    %572 = vector.broadcast %c1_i32_132 : i32 to vector<8x16xi32>
    %573 = arith.cmpi eq, %38, %572 : vector<8x16xi32>
    %574 = vector.extract_strided_slice %564 {offsets = [0, 1], sizes = [8, 1], strides = [1, 1]} : vector<8x8xf32> to vector<8x1xf32>
    %575 = vector.shape_cast %574 : vector<8x1xf32> to vector<8x1xf32>
    %576 = vector.broadcast %575 : vector<8x1xf32> to vector<8x16xf32>
    %577 = arith.select %573, %576, %571 : vector<8x16xi1>, vector<8x16xf32>
    %c2_i32_133 = arith.constant 2 : i32
    %578 = vector.broadcast %c2_i32_133 : i32 to vector<8x16xi32>
    %579 = arith.cmpi eq, %38, %578 : vector<8x16xi32>
    %580 = vector.extract_strided_slice %564 {offsets = [0, 2], sizes = [8, 1], strides = [1, 1]} : vector<8x8xf32> to vector<8x1xf32>
    %581 = vector.shape_cast %580 : vector<8x1xf32> to vector<8x1xf32>
    %582 = vector.broadcast %581 : vector<8x1xf32> to vector<8x16xf32>
    %583 = arith.select %579, %582, %577 : vector<8x16xi1>, vector<8x16xf32>
    %c3_i32_134 = arith.constant 3 : i32
    %584 = vector.broadcast %c3_i32_134 : i32 to vector<8x16xi32>
    %585 = arith.cmpi eq, %38, %584 : vector<8x16xi32>
    %586 = vector.extract_strided_slice %564 {offsets = [0, 3], sizes = [8, 1], strides = [1, 1]} : vector<8x8xf32> to vector<8x1xf32>
    %587 = vector.shape_cast %586 : vector<8x1xf32> to vector<8x1xf32>
    %588 = vector.broadcast %587 : vector<8x1xf32> to vector<8x16xf32>
    %589 = arith.select %585, %588, %583 : vector<8x16xi1>, vector<8x16xf32>
    %c4_i32_135 = arith.constant 4 : i32
    %590 = vector.broadcast %c4_i32_135 : i32 to vector<8x16xi32>
    %591 = arith.cmpi eq, %38, %590 : vector<8x16xi32>
    %592 = vector.extract_strided_slice %564 {offsets = [0, 4], sizes = [8, 1], strides = [1, 1]} : vector<8x8xf32> to vector<8x1xf32>
    %593 = vector.shape_cast %592 : vector<8x1xf32> to vector<8x1xf32>
    %594 = vector.broadcast %593 : vector<8x1xf32> to vector<8x16xf32>
    %595 = arith.select %591, %594, %589 : vector<8x16xi1>, vector<8x16xf32>
    %c5_i32_136 = arith.constant 5 : i32
    %596 = vector.broadcast %c5_i32_136 : i32 to vector<8x16xi32>
    %597 = arith.cmpi eq, %38, %596 : vector<8x16xi32>
    %598 = vector.extract_strided_slice %564 {offsets = [0, 5], sizes = [8, 1], strides = [1, 1]} : vector<8x8xf32> to vector<8x1xf32>
    %599 = vector.shape_cast %598 : vector<8x1xf32> to vector<8x1xf32>
    %600 = vector.broadcast %599 : vector<8x1xf32> to vector<8x16xf32>
    %601 = arith.select %597, %600, %595 : vector<8x16xi1>, vector<8x16xf32>
    %c6_i32_137 = arith.constant 6 : i32
    %602 = vector.broadcast %c6_i32_137 : i32 to vector<8x16xi32>
    %603 = arith.cmpi eq, %38, %602 : vector<8x16xi32>
    %604 = vector.extract_strided_slice %564 {offsets = [0, 6], sizes = [8, 1], strides = [1, 1]} : vector<8x8xf32> to vector<8x1xf32>
    %605 = vector.shape_cast %604 : vector<8x1xf32> to vector<8x1xf32>
    %606 = vector.broadcast %605 : vector<8x1xf32> to vector<8x16xf32>
    %607 = arith.select %603, %606, %601 : vector<8x16xi1>, vector<8x16xf32>
    %c7_i32_138 = arith.constant 7 : i32
    %608 = vector.broadcast %c7_i32_138 : i32 to vector<8x16xi32>
    %609 = arith.cmpi eq, %38, %608 : vector<8x16xi32>
    %610 = vector.extract_strided_slice %564 {offsets = [0, 7], sizes = [8, 1], strides = [1, 1]} : vector<8x8xf32> to vector<8x1xf32>
    %611 = vector.shape_cast %610 : vector<8x1xf32> to vector<8x1xf32>
    %612 = vector.broadcast %611 : vector<8x1xf32> to vector<8x16xf32>
    %613 = arith.select %609, %612, %607 : vector<8x16xi1>, vector<8x16xf32>
    %614 = arith.addf %563, %613 : vector<8x16xf32>
    %cst_139 = arith.constant 0.353553385 : f32
    %615 = vector.broadcast %cst_139 : f32 to vector<8x16xf32>
    %616 = arith.mulf %614, %615 : vector<8x16xf32>
    %cst_140 = arith.constant -1.000000e+30 : f32
    %617 = vector.broadcast %cst_140 : f32 to vector<8x16xf32>
    %618 = arith.select %43, %616, %617 : vector<8x16xi1>, vector<8x16xf32>
    %cst_141 = arith.constant dense<0xFF800000> : vector<8xf32>
    %619 = vector.multi_reduction <maximumf>, %618, %cst_141 [1] : vector<8x16xf32> to vector<8xf32>
    %620 = vector.shape_cast %619 : vector<8xf32> to vector<8x1xf32>
    %621 = vector.broadcast %620 : vector<8x1xf32> to vector<8x16xf32>
    %622 = arith.subf %618, %621 : vector<8x16xf32>
    %623 = math.exp %622 : vector<8x16xf32>
    %cst_142 = arith.constant dense<0.000000e+00> : vector<8xf32>
    %624 = vector.multi_reduction <add>, %623, %cst_142 [1] : vector<8x16xf32> to vector<8xf32>
    %625 = vector.shape_cast %624 : vector<8xf32> to vector<8x1xf32>
    %626 = vector.broadcast %625 : vector<8x1xf32> to vector<8x16xf32>
    %627 = arith.divf %623, %626 : vector<8x16xf32>
    %cst_143 = arith.constant dense<0.000000e+00> : vector<8x8xf32>
    %628 = tpu.matmul %627, %558, %cst_143 {dimension_numbers = #tpu.dot_dimension_numbers<[1], [0], [0], [1], [0, 0, 1, 1], [], []>} : vector<8x16xf32>, vector<16x8xf32>, vector<8x8xf32> -> vector<8x8xf32>
    %629 = tpu.concatenate %409, %482, %555, %628 in 1 : vector<8x8xf32>, vector<8x8xf32>, vector<8x8xf32>, vector<8x8xf32> -> vector<8x32xf32>
    %630 = tpu.concatenate %336, %629 in 0 : vector<8x32xf32>, vector<8x32xf32> -> vector<16x32xf32>
    %c0_144 = arith.constant 0 : index
    %c0_145 = arith.constant 0 : index
    %631 = vector.load %arg5[%c0_144, %c0_145] : memref<32x32xf32, #tpu.memory_space<vmem>>, vector<32x32xf32>
    %cst_146 = arith.constant dense<0.000000e+00> : vector<16x32xf32>
    %632 = tpu.matmul %630, %631, %cst_146 {dimension_numbers = #tpu.dot_dimension_numbers<[1], [0], [0], [1], [0, 0, 1, 1], [], []>} : vector<16x32xf32>, vector<32x32xf32>, vector<16x32xf32> -> vector<16x32xf32>
    %cst_147 = arith.constant 0.000000e+00 : f32
    %633 = vector.broadcast %cst_147 : f32 to vector<16x32xf32>
    %634 = arith.maximumf %632, %633 : vector<16x32xf32>
    %635 = arith.addf %33, %634 : vector<16x32xf32>
    %c0_148 = arith.constant 0 : index
    %c0_149 = arith.constant 0 : index
    %636 = vector.load %arg6[%c0_148, %c0_149] : memref<1x32xf32, #tpu.memory_space<vmem>>, vector<1x32xf32>
    %c0_150 = arith.constant 0 : index
    %c0_151 = arith.constant 0 : index
    %637 = vector.load %arg7[%c0_150, %c0_151] : memref<1x32xf32, #tpu.memory_space<vmem>>, vector<1x32xf32>
    %cst_152 = arith.constant dense<0.000000e+00> : vector<16xf32>
    %638 = vector.multi_reduction <add>, %635, %cst_152 [1] : vector<16x32xf32> to vector<16xf32>
    %639 = vector.shape_cast %638 : vector<16xf32> to vector<16x1xf32>
    %cst_153 = arith.constant 3.200000e+01 : f32
    %640 = vector.broadcast %cst_153 : f32 to vector<16x1xf32>
    %641 = arith.divf %639, %640 : vector<16x1xf32>
    %642 = vector.broadcast %641 : vector<16x1xf32> to vector<16x32xf32>
    %643 = arith.subf %635, %642 : vector<16x32xf32>
    %644 = arith.mulf %643, %643 : vector<16x32xf32>
    %cst_154 = arith.constant dense<0.000000e+00> : vector<16xf32>
    %645 = vector.multi_reduction <add>, %644, %cst_154 [1] : vector<16x32xf32> to vector<16xf32>
    %646 = vector.shape_cast %645 : vector<16xf32> to vector<16x1xf32>
    %cst_155 = arith.constant 3.200000e+01 : f32
    %647 = vector.broadcast %cst_155 : f32 to vector<16x1xf32>
    %648 = arith.divf %646, %647 : vector<16x1xf32>
    %cst_156 = arith.constant 9.99999974E-6 : f32
    %649 = vector.broadcast %cst_156 : f32 to vector<16x1xf32>
    %650 = arith.addf %648, %649 : vector<16x1xf32>
    %651 = math.rsqrt %650 : vector<16x1xf32>
    %652 = vector.broadcast %651 : vector<16x1xf32> to vector<16x32xf32>
    %653 = arith.mulf %643, %652 : vector<16x32xf32>
    %654 = vector.broadcast %636 : vector<1x32xf32> to vector<16x32xf32>
    %655 = arith.mulf %653, %654 : vector<16x32xf32>
    %656 = vector.broadcast %637 : vector<1x32xf32> to vector<16x32xf32>
    %657 = arith.addf %655, %656 : vector<16x32xf32>
    %c0_157 = arith.constant 0 : index
    %c0_158 = arith.constant 0 : index
    %658 = vector.load %arg8[%c0_157, %c0_158] : memref<32x64xf32, #tpu.memory_space<vmem>>, vector<32x64xf32>
    %cst_159 = arith.constant dense<0.000000e+00> : vector<16x64xf32>
    %659 = tpu.matmul %657, %658, %cst_159 {dimension_numbers = #tpu.dot_dimension_numbers<[1], [0], [0], [1], [0, 0, 1, 1], [], []>} : vector<16x32xf32>, vector<32x64xf32>, vector<16x64xf32> -> vector<16x64xf32>
    %c0_160 = arith.constant 0 : index
    %c0_161 = arith.constant 0 : index
    %660 = vector.load %arg9[%c0_160, %c0_161] : memref<1x64xf32, #tpu.memory_space<vmem>>, vector<1x64xf32>
    %661 = vector.broadcast %660 : vector<1x64xf32> to vector<16x64xf32>
    %662 = arith.addf %659, %661 : vector<16x64xf32>
    %cst_162 = arith.constant 0.000000e+00 : f32
    %663 = vector.broadcast %cst_162 : f32 to vector<16x64xf32>
    %664 = arith.maximumf %662, %663 : vector<16x64xf32>
    %c0_163 = arith.constant 0 : index
    %c0_164 = arith.constant 0 : index
    %665 = vector.load %arg10[%c0_163, %c0_164] : memref<64x32xf32, #tpu.memory_space<vmem>>, vector<64x32xf32>
    %cst_165 = arith.constant dense<0.000000e+00> : vector<16x32xf32>
    %666 = tpu.matmul %664, %665, %cst_165 {dimension_numbers = #tpu.dot_dimension_numbers<[1], [0], [0], [1], [0, 0, 1, 1], [], []>} : vector<16x64xf32>, vector<64x32xf32>, vector<16x32xf32> -> vector<16x32xf32>
    %c0_166 = arith.constant 0 : index
    %c0_167 = arith.constant 0 : index
    %667 = vector.load %arg11[%c0_166, %c0_167] : memref<1x32xf32, #tpu.memory_space<vmem>>, vector<1x32xf32>
    %668 = vector.broadcast %667 : vector<1x32xf32> to vector<16x32xf32>
    %669 = arith.addf %666, %668 : vector<16x32xf32>
    %cst_168 = arith.constant 0.000000e+00 : f32
    %670 = vector.broadcast %cst_168 : f32 to vector<16x32xf32>
    %671 = arith.maximumf %669, %670 : vector<16x32xf32>
    %672 = arith.addf %671, %635 : vector<16x32xf32>
    %c0_169 = arith.constant 0 : index
    %c0_170 = arith.constant 0 : index
    %673 = vector.load %arg12[%c0_169, %c0_170] : memref<16x32xf32, #tpu.memory_space<vmem>>, vector<16x32xf32>
    tpu.vector_store %arg12[%c0_169, %c0_170], %672 {strides = array<i32>} : memref<16x32xf32, #tpu.memory_space<vmem>>, vector<16x32xf32>,
    return
  }
}

</mosaic_0001>

<bundles_post_ra>
// kernel: transformer_seq_layer.1
= control target key start
LH: loop header
LB: loop body
LE: loop exit
PB: predicated region body
PF: predicated region fallthrough
CT: control target
= control target key end

     0   :  { %vm2582_vm0 = vcmask 261120   ;;  %s2569_s0 = inlined_call_operand.vmem [shape: f32[32,32], index: 0, kind: input, shape index: {}]   ;;  %s2570_s1 = inlined_call_operand.vmem [shape: f32[32,32], index: 1, kind: input, shape index: {}]   ;;  %s2571_s2 = inlined_call_operand.vmem [shape: f32[1,32], index: 2, kind: input, shape index: {}]   ;;  %s2572_s3 = inlined_call_operand.vmem [shape: f32[1,32], index: 3, kind: input, shape index: {}]   ;;  %s2573_s4 = inlined_call_operand.vmem [shape: f32[32,96], index: 4, kind: input, shape index: {}]   ;;  %s2574_s5 = inlined_call_operand.vmem [shape: f32[32,32], index: 5, kind: input, shape index: {}]   ;;  %s2575_s6 = inlined_call_operand.vmem [shape: f32[1,32], index: 6, kind: input, shape index: {}]   ;;  %s2576_s7 = inlined_call_operand.vmem [shape: f32[1,32], index: 7, kind: input, shape index: {}]   ;;  %s2577_s8 = inlined_call_operand.vmem [shape: f32[32,64], index: 8, kind: input, shape index: {}]   ;;  %s2578_s9 = inlined_call_operand.vmem [shape: f32[1,64], index: 9, kind: input, shape index: {}]   ;;  %s2579_s10 = inlined_call_operand.vmem [shape: f32[64,32], index: 10, kind: input, shape index: {}]   ;;  %s2580_s11 = inlined_call_operand.vmem [shape: f32[1,32], index: 11, kind: input, shape index: {}]   ;;  %s2581_s12 = inlined_call_operand.hbm [shape: f32[16,32], index: 12, kind: output, shape index: {}]  }
   0x1   :  { %v42_v0 = vld [vmem:[%s2569_s0] sm:$0xff]  ;;  %v44_v1 = vld [vmem:[%s2569_s0 + $0x10] sm:$0xff] }
   0x2   :  { %v49_v2 = vsel %vm2582_vm0, %v42_v0, 0.0  ;;  %v55_v3 = vsel %vm2582_vm0, %v44_v1, 0.0 }
   0x3   :  { %50 = vadd.xlane.f32.xlu0 %v49_v2  ;;  %56 = vadd.xlane.f32.xlu2 %v55_v3 }
   0x4   :  { %17 = vsyncpa [#allocation3], 0  ;;  %v43_v4 = vld [vmem:[%s2569_s0 + $0x8] sm:$0xff]  ;;  %v45_v6 = vld [vmem:[%s2569_s0 + $0x18] sm:$0xff]  ;;  %v1800_v8 = vmov 32.0   ;;  %s1801_s28 = smov 96  }
   0x5   :  { %v52_v5 = vsel %vm2582_vm0, %v43_v4, 0.0  ;;  %v58_v7 = vsel %vm2582_vm0, %v45_v6, 0.0  ;;  %1726 = vrcp.f32 %v1800_v8  ;;  %v161_v35 = vld [vmem:[%s2573_s4 + $0x18] sm:$0xff]  ;;  %v160_v36 = vld [vmem:[%s2573_s4 + $0x10] sm:$0xff]  ;;  %v159_v37 = vld [vmem:[%s2573_s4 + $0x8] sm:$0xff]  ;;  %s1802_s29 = smov 120  }
   0x6   :  { %186 = vmatpush.msra.mxu0 %v161_v35  ;;  %v158_v38 = vld [vmem:[%s2573_s4] sm:$0xff]  ;;  %s1803_s30 = smov 88   ;;  %vm249_vm14 = vcmask 64512   ;;  %s1821_s13 = smov 80  }
   0x7   :  { %v1720_v53 = vld [vmem:[%s2571_s2] ss:$0 sm:$0xff]  ;;  %s1823_s14 = smov 64   ;;  %s1824_s15 = smov 72  }
   0x8   :  { %187 = vmatpush.msra.mxu0 %v160_v36  ;;  %v1721_v57 = vld [vmem:[%s2572_s3] ss:$0 sm:$0xff]  ;;  %s1830_s16 = smov 104   ;;  %s1831_s17 = smov 112  }
   0x9   :  { %s1842_s18 = smov 40   ;;  %s1843_s4 = smov 48  }
   0xa   :  { %188 = vmatpush.msra.mxu0 %v159_v37  ;;  %s1844_s19 = smov 16   ;;  %s1845_s20 = smov 24  }
   0xb   :  { %53 = vadd.xlane.f32.xlu0 %v52_v5  ;;  %59 = vadd.xlane.f32.xlu2 %v58_v7  ;;  %v1727_v9 = vpop.eup %1726  ;;  %s1846_s21 = smov 8  }
   0xc   :  { %v62_v10 = vmul.f32 32.0, %v1727_v9  ;;  %vm66_vm1 = vweird.f32 %v1727_v9  ;;  %189 = vmatpush.msra.mxu0 %v158_v38  ;;  %v1804_v38 = vmov 8  }
   0xd   :  { %1618 = vset.pattern.permute.xlu0 %v1804_v38 }
   0xe   :  { %v63_v11 = vsub.f32 1.0, %v62_v10 }
  0x10   :  { %v64_v12 = vmul.f32 %v1727_v9, %v63_v11 }
  0x12   :  { %v65_v13 = vadd.f32 %v1727_v9, %v64_v12 }
  0x14   :  { %v1930_v14 = vsel %vm66_vm1, %v1727_v9, %v65_v13 }
  0x76   :  { %v51_v15 = vpop.xlane.xlu0 %50  ;;  %v57_v25 = vpop.xlane.xlu2 %56 }
  0x77   :  { %v68_v16 = vmul.f32 %v1930_v14, %v51_v15  ;;  %v70_v26 = vmul.f32 %v1930_v14, %v57_v25  ;;  %v206_v25 = vld [vmem:[%s2570_s1 + $0x18] sm:$0xff] }
  0x78   :  { %225 = vmatpush.msra.mxu1 %v206_v25 }
  0x79   :  { %v72_v17 = vsub.f32 %v42_v0, %v68_v16  ;;  %v1937_v27 = vsub.f32 %v44_v1, %v70_v26  ;;  %v205_v26 = vld [vmem:[%s2570_s1 + $0x10] sm:$0xff] }
  0x7a   :  { %226 = vmatpush.msra.mxu1 %v205_v26 }
  0x7b   :  { %v76_v18 = vmul.f32 %v72_v17, %v72_v17  ;;  %v78_v28 = vmul.f32 %v1937_v27, %v1937_v27 }
  0x7d   :  { %v80_v19 = vsel %vm2582_vm0, %v76_v18, 0.0  ;;  %v86_v29 = vsel %vm2582_vm0, %v78_v28, 0.0  ;;  %v204_v28 = vld [vmem:[%s2570_s1 + $0x8] sm:$0xff] }
  0x7e   :  { %81 = vadd.xlane.f32.xlu1 %v80_v19  ;;  %v54_v20 = vpop.xlane.xlu0 %53  ;;  %87 = vadd.xlane.f32.xlu0 %v86_v29  ;;  %v60_v30 = vpop.xlane.xlu2 %59 }
  0x7f   :  { %v69_v21 = vmul.f32 %v1930_v14, %v54_v20  ;;  %v71_v31 = vmul.f32 %v1930_v14, %v60_v30  ;;  %227 = vmatpush.msra.mxu1 %v204_v28 }
  0x81   :  { %v73_v22 = vsub.f32 %v43_v4, %v69_v21  ;;  %v1943_v32 = vsub.f32 %v45_v6, %v71_v31  ;;  %v203_v31 = vld [vmem:[%s2570_s1] sm:$0xff]  ;;  %s1820_s1 = smov 56  }
  0x82   :  { %228 = vmatpush.msra.mxu1 %v203_v31 }
  0x83   :  { %v77_v23 = vmul.f32 %v73_v22, %v73_v22  ;;  %v79_v33 = vmul.f32 %v1943_v32, %v1943_v32 }
  0x85   :  { %v83_v24 = vsel %vm2582_vm0, %v77_v23, 0.0  ;;  %v89_v34 = vsel %vm2582_vm0, %v79_v33, 0.0 }
  0x86   :  { %84 = vadd.xlane.f32.xlu1 %v83_v24 }
  0x8e   :  { %90 = vadd.xlane.f32.xlu1 %v89_v34 }
  0xf1   :  { %v82_v39 = vpop.xlane.xlu1 %81  ;;  %v88_v3 = vpop.xlane.xlu0 %87 }
  0xf2   :  { %v92_v40 = vmul.f32 %v82_v39, %v1930_v14  ;;  %v94_v4 = vmul.f32 %v88_v3, %v1930_v14  ;;  %v1805_v39 = vmov 1   ;;  %v236_v3 = vlaneseq }
  0xf3   :  { %1617 = vset.pattern.permute.xlu1 %v1805_v39 }
  0xf4   :  { %v96_v41 = vadd.f32 1e-05, %v92_v40  ;;  %v98_v5 = vadd.f32 1e-05, %v94_v4  ;;  %v1806_v40 = vmov 0  }
  0xf5   :  { %1616 = vset.pattern.permute.xlu2 %v1806_v40 }
  0xf6   :  { %1728 = vrsqrt.f32 %v96_v41  ;;  %vm106_vm3 = vweird.f32 %v96_v41  ;;  %vm126_vm8 = vweird.f32 %v98_v5 }
  0xf9   :  { %v85_v42 = vpop.xlane.xlu1 %84 }
  0xfa   :  { %v93_v43 = vmul.f32 %v85_v42, %v1930_v14 }
  0xfc   :  { %v1729_v44 = vpop.eup %1728  ;;  %v97_v45 = vadd.f32 1e-05, %v93_v43 }
  0xfd   :  { %v101_v46 = vmul.f32 %v1729_v44, %v96_v41  ;;  %vm107_vm2 = vweird.f32 %v1729_v44 }
  0xfe   :  { %1730 = vrsqrt.f32 %v97_v45  ;;  %vm108_vm4 = vmor %vm106_vm3, %vm107_vm2  ;;  %vm116_vm6 = vweird.f32 %v97_v45 }
  0xff   :  { %v102_v47 = vmul.f32 %v1729_v44, %v101_v46  ;;  %1732 = vrsqrt.f32 %v98_v5 }
 0x101   :  { %v103_v48 = vmul.f32 0.5, %v102_v47  ;;  %v1807_v47 = vmov 4  }
 0x103   :  { %v104_v49 = vsub.f32 1.5, %v103_v48  ;;  %v1808_v48 = vmov 9  }
 0x104   :  { %v1731_v50 = vpop.eup %1730 }
 0x105   :  { %v105_v51 = vmul.f32 %v1729_v44, %v104_v49  ;;  %v111_v52 = vmul.f32 %v1731_v50, %v97_v45  ;;  %vm117_vm5 = vweird.f32 %v1731_v50  ;;  %v1733_v6 = vpop.eup %1732  ;;  %v1809_v49 = vmov 2  }
 0x106   :  { %vm118_vm7 = vmor %vm116_vm6, %vm117_vm5  ;;  %v121_v7 = vmul.f32 %v1733_v6, %v98_v5  ;;  %vm127_vm9 = vweird.f32 %v1733_v6  ;;  %v237_v5 = vand.u32 127, %v236_v3 }
 0x107   :  { %v109_v54 = vsel %vm108_vm4, %v1729_v44, %v105_v51  ;;  %v112_v55 = vmul.f32 %v1731_v50, %v111_v52  ;;  %vm128_vm10 = vmor %vm126_vm8, %vm127_vm9  ;;  %v1811_v51 = vmov 10   ;;  %v1812_v52 = vmov 3  }
 0x108   :  { %v140_v56 = vmul.f32 %v109_v54, %v72_v17  ;;  %v122_v8 = vmul.f32 %v1733_v6, %v121_v7  ;;  %v91_v17 = vpop.xlane.xlu1 %90  ;;  %v1814_v54 = vmov 11  }
 0x109   :  { %v113_v58 = vmul.f32 0.5, %v112_v55  ;;  %v95_v18 = vmul.f32 %v91_v17, %v1930_v14  ;;  %v1815_v55 = vmov 6  }
 0x10a   :  { %v147_v59 = vmul.f32 %v1720_v53, %v140_v56  ;;  %v123_v9 = vmul.f32 0.5, %v122_v8  ;;  %v1816_v56 = vmov 12  }
 0x10b   :  { %v114_v60 = vsub.f32 1.5, %v113_v58  ;;  %v99_v19 = vadd.f32 1e-05, %v95_v18  ;;  %v1818_v58 = vmov 7  }
 0x10c   :  { %v154_v61 = vadd.f32 %v1721_v57, %v147_v59  ;;  %v124_v10 = vsub.f32 1.5, %v123_v9  ;;  %v1819_v59 = vmov 15  }
 0x10d   :  { %v115_v62 = vmul.f32 %v1731_v50, %v114_v60  ;;  %1734 = vrsqrt.f32 %v99_v19  ;;  %vm136_vm11 = vweird.f32 %v99_v19 }
 0x10e   :  { %1523 = vmatmul.msk.f32.vlgmr.msra.gmra.mxu0 %vm2582_vm0, %v154_v61  ;;  %v125_v11 = vmul.f32 %v1733_v6, %v124_v10 }
 0x10f   :  { %v119_v63 = vsel %vm118_vm7, %v1731_v50, %v115_v62  ;;  %v1810_v50 = vmov 13  }
 0x110   :  { %v141_v0 = vmul.f32 %v119_v63, %v73_v22  ;;  %v129_v12 = vsel %vm128_vm10, %v1733_v6, %v125_v11  ;;  %v239_v6 = vshrl.u32 %v236_v3, 7 }
 0x111   :  { %v142_v13 = vmul.f32 %v129_v12, %v1937_v27 }
 0x112   :  { %v148_v1 = vmul.f32 %v1720_v53, %v141_v0  ;;  %v2059_v8 = vsub.s32 %v237_v5, %v239_v6 }
 0x113   :  { %v149_v15 = vmul.f32 %v1720_v53, %v142_v13  ;;  %v1735_v20 = vpop.eup %1734 }
 0x114   :  { %v155_v2 = vadd.f32 %v1721_v57, %v148_v1  ;;  %v131_v21 = vmul.f32 %v1735_v20, %v99_v19  ;;  %vm137_vm12 = vweird.f32 %v1735_v20  ;;  %vm278_vm15 = vcmp.eq.s32.totalorder %v2059_v8, 0 }
 0x115   :  { %v156_v16 = vadd.f32 %v1721_v57, %v149_v15  ;;  %vm138_vm13 = vmor %vm136_vm11, %vm137_vm12  ;;  %vm285_vm1 = vcmp.eq.s32.totalorder %v2059_v8, 1  ;;  %vm291_vm2 = vcmp.eq.s32.totalorder %v2059_v8, 2  ;;  %vm297_vm3 = vcmp.eq.s32.totalorder %v2059_v8, 3 }
 0x116   :  { %1524 = vmatmul.msk.f32.gmra.mxu0 %vm2582_vm0, %v155_v2  ;;  %v132_v22 = vmul.f32 %v1735_v20, %v131_v21  ;;  %vm303_vm4 = vcmp.eq.s32.totalorder %v2059_v8, 4  ;;  %vm2585_vm5 = vcmp.eq.s32.totalorder %v2059_v8, 5  ;;  %vm2584_vm6 = vcmp.eq.s32.totalorder %v2059_v8, 6 }
 0x117   :  { %vm2583_vm8 = vcmp.eq.s32.totalorder %v2059_v8, 7  ;;  %vm241_vm9 = vcmp.ge.s32.totalorder %v2059_v8, 0  ;;  %vm242_vm10 = vcmp.lt.s32.totalorder %v2059_v8, 8  ;;  %vm330_vm12 = vcmask 130048  }
 0x118   :  { %v133_v23 = vmul.f32 0.5, %v132_v22  ;;  %vm2095_vm11 = vmand %vm241_vm9, %vm242_vm10 }
 0x11a   :  { %v134_v24 = vsub.f32 1.5, %v133_v23 }
 0x11c   :  { %v135_v27 = vmul.f32 %v1735_v20, %v134_v24 }
 0x11e   :  { %1525 = vmatmul.msk.f32.gmra.mxu0 %vm2582_vm0, %v156_v16  ;;  %v139_v29 = vsel %vm138_vm13, %v1735_v20, %v135_v27 }
 0x11f   :  { %v143_v30 = vmul.f32 %v139_v29, %v1943_v32 }
 0x121   :  { %v150_v33 = vmul.f32 %v1720_v53, %v143_v30  ;;  %v1813_v53 = vmov 5  }
 0x123   :  { %v157_v34 = vadd.f32 %v1721_v57, %v150_v33  ;;  %v1817_v57 = vmov 14  }
 0x126   :  { %1526 = vmatmul.msk.f32.gmra.mxu0 %vm2582_vm0, %v157_v34 }
 0x18b   :  { %v1988_v35 = vpop.f32.mrf.mxu0 }
 0x18c   :  { %245 = vrot.lane.b32.xlu0 %v1988_v35, %s1801_s28 }
 0x193   :  { %v1992_v36 = vpop.f32.mrf.mxu0 }
 0x194   :  { %384 = vrot.lane.b32.xlu0 %v1992_v36, %s1802_s29  ;;  %388 = vrot.lane.b32.xlu1 %v1992_v36, %s1803_s30  ;;  %v2053_v60 = vpack.i.bf16 %v1988_v35, %v1992_v36 }
 0x195   :  { %247 = vrot.lane.b32.xlu2 %v1992_v36, %s1801_s28  ;;  %1527 = vmatmul.msk.f32.vlgmr.msra.gmra.mxu1 %vm2582_vm0, %v1992_v36 }
 0x19b   :  { %v2004_v32 = vpop.f32.mrf.mxu0 }
 0x19d   :  { %386 = vrot.lane.b32.xlu2 %v1988_v35, %s1803_s30 }
 0x1a3   :  { %v2010_v41 = vpop.f32.mrf.mxu0 }
 0x1a4   :  { %1528 = vmatmul.msk.f32.gmra.mxu1 %vm2582_vm0, %v2010_v41 }
 0x1ef   :  { %v248_v37 = vpop.permute.xlu2 %247 }
 0x1f0   :  { %1529 = vmatpush.xpose.msk.msra.mxu2 %vm249_vm14, %v248_v37 }
 0x1f7   :  { %v387_v44 = vpop.permute.xlu2 %386 }
 0x1fe   :  { %v246_v42 = vpop.permute.xlu0 %245 }
 0x1ff   :  { %1530 = vmatpush.xpose.msk.msra.mxu2 %vm249_vm14, %v246_v42 }
 0x202   :  { %1531 = vmatmul.msk.f32.vlgmr.msra.gmra.mxu2 %vm249_vm14, %v1992_v36 }
 0x206   :  { %v389_v43 = vpop.permute.xlu1 %388  ;;  %v385_v45 = vpop.permute.xlu0 %384 }
 0x207   :  { %1533 = vmatpush.xpose.msk.msrb.mxu0 %vm249_vm14, %v389_v43 }
 0x20b   :  { %1534 = vmatpush.xpose.msk.msrb.mxu0 %vm249_vm14, %v387_v44 }
 0x20e   :  { %1535 = vmatmul.msk.f32.vlgmr.msrb.gmra.mxu0 %vm249_vm14, %v385_v45 }
 0x212   :  { %v2020_v46 = vpop.f32.mrf.mxu1 }
 0x213   :  { %419 = vperm.xlu0 %1618, %v2020_v46   ;;  %287 = vperm.xlu1 %1617, %v2020_v46  }
 0x214   :  { %281 = vperm.xlu2 %1616, %v2020_v46  }
 0x21b   :  { %1623 = vset.pattern.permute.xlu0 %v1807_v47  ;;  %1620 = vset.pattern.permute.xlu1 %v1808_v48 }
 0x21c   :  { %1619 = vset.pattern.permute.xlu2 %v1809_v49  ;;  %305 = vperm.xlu0 %1623, %v2020_v46  }
 0x21d   :  { %424 = vperm.xlu1 %1620, %v2020_v46   ;;  %293 = vperm.xlu2 %1619, %v2020_v46  }
 0x224   :  { %1628 = vset.pattern.permute.xlu0 %v1810_v50 }
 0x225   :  { %1622 = vset.pattern.permute.xlu1 %v1811_v51  ;;  %1621 = vset.pattern.permute.xlu2 %v1812_v52 }
 0x226   :  { %444 = vperm.xlu0 %1628, %v2020_v46   ;;  %429 = vperm.xlu1 %1622, %v2020_v46  }
 0x227   :  { %299 = vperm.xlu2 %1621, %v2020_v46  }
 0x22e   :  { %1625 = vset.pattern.permute.xlu1 %v1813_v53 }
 0x22f   :  { %1624 = vset.pattern.permute.xlu2 %v1814_v54  ;;  %311 = vperm.xlu1 %1625, %v2020_v46  }
 0x230   :  { %434 = vperm.xlu2 %1624, %v2020_v46  }
 0x237   :  { %1627 = vset.pattern.permute.xlu1 %v1815_v55 }
 0x238   :  { %1626 = vset.pattern.permute.xlu2 %v1816_v56  ;;  %317 = vperm.xlu1 %1627, %v2020_v46  }
 0x239   :  { %439 = vperm.xlu2 %1626, %v2020_v46  }
 0x240   :  { %1630 = vset.pattern.permute.xlu1 %v1817_v57 }
 0x241   :  { %1629 = vset.pattern.permute.xlu2 %v1818_v58  ;;  %449 = vperm.xlu1 %1630, %v2020_v46  }
 0x242   :  { %323 = vperm.xlu2 %1629, %v2020_v46  }
 0x24a   :  { %1631 = vset.pattern.permute.xlu2 %v1819_v59 }
 0x24b   :  { %454 = vperm.xlu2 %1631, %v2020_v46  }
 0x253   :  { %1638 = vrot.lane.b32.xlu2 %v2053_v60, %s1820_s1 }
 0x25b   :  { %516 = vrot.lane.b32.xlu2 %v1988_v35, %s1821_s13 }
 0x26e   :  { %v282_v61 = vpop.permute.xlu2 %281 }
 0x26f   :  { %v284_v11 = vsel %vm278_vm15, %v282_v61, 0.0 }
 0x277   :  { %v294_v62 = vpop.permute.xlu2 %293 }
 0x281   :  { %v300_v63 = vpop.permute.xlu2 %299 }
 0x285   :  { %v288_v0 = vpop.permute.xlu1 %287  ;;  %v420_v9 = vpop.permute.xlu0 %419 }
 0x286   :  { %v290_v13 = vsel %vm285_vm1, %v288_v0, %v284_v11  ;;  %v273_v17 = vpop.f32.mrf.mxu2  ;;  %v422_v19 = vsel %vm278_vm15, %v420_v9, 0.0  ;;  %v1822_v9 = vmov 16   ;;  %v1826_v11 = vmov 28  }
 0x287   :  { %v296_v15 = vsel %vm291_vm2, %v294_v62, %v290_v13  ;;  %vm276_vm7 = vcmp.eq.f32.partialorder %v273_v17, 0.0  ;;  %1642 = vset.pattern.permute.xlu0 %v1822_v9 }
 0x288   :  { %v302_v20 = vsel %vm297_vm3, %v300_v63, %v296_v15  ;;  %v277_v27 = vsel %vm276_vm7, -1000000.0, %v273_v17 }
 0x28a   :  { %v435_v1 = vpop.permute.xlu2 %434 }
 0x28b   :  { %v413_v37 = vpop.f32.mrf.mxu0 }
 0x28c   :  { %vm416_vm13 = vcmp.eq.f32.partialorder %v413_v37, 0.0 }
 0x28e   :  { %v306_v18 = vpop.permute.xlu0 %305 }
 0x28f   :  { %v425_v2 = vpop.permute.xlu1 %424  ;;  %v308_v22 = vsel %vm303_vm4, %v306_v18, %v302_v20 }
 0x290   :  { %v427_v21 = vsel %vm285_vm1, %v425_v2, %v422_v19  ;;  %v417_v2 = vsel %vm416_vm13, -1000000.0, %v413_v37  ;;  %v1834_v37 = vmov 18  }
 0x293   :  { %v440_v4 = vpop.permute.xlu2 %439 }
 0x298   :  { %v430_v7 = vpop.permute.xlu1 %429  ;;  %v445_v61 = vpop.permute.xlu0 %444 }
 0x299   :  { %v432_v23 = vsel %vm291_vm2, %v430_v7, %v427_v21 }
 0x29a   :  { %v437_v29 = vsel %vm297_vm3, %v435_v1, %v432_v23  ;;  %v1829_v23 = vmov 17  }
 0x29b   :  { %v442_v43 = vsel %vm303_vm4, %v440_v4, %v437_v29  ;;  %1643 = vset.pattern.permute.xlu1 %v1829_v23 }
 0x29c   :  { %v324_v10 = vpop.permute.xlu2 %323  ;;  %v447_v63 = vsel %vm2585_vm5, %v445_v61, %v442_v43  ;;  %v1837_v43 = vmov 29   ;;  %v1840_v61 = vmov 22  }
 0x2a1   :  { %v312_v12 = vpop.permute.xlu1 %311 }
 0x2a2   :  { %v314_v24 = vsel %vm2585_vm5, %v312_v12, %v308_v22  ;;  %v1827_v12 = vmov 31  }
 0x2a5   :  { %v455_v16 = vpop.permute.xlu2 %454 }
 0x2aa   :  { %v318_v25 = vpop.permute.xlu1 %317 }
 0x2ab   :  { %v320_v26 = vsel %vm2584_vm6, %v318_v25, %v314_v24 }
 0x2ac   :  { %v326_v28 = vsel %vm2583_vm8, %v324_v10, %v320_v26  ;;  %v1825_v10 = vmov 19  }
 0x2ad   :  { %v1639_v30 = vpop.permute.xlu2 %1638  ;;  %v327_v31 = vadd.f32 %v326_v28, %v277_v27 }
 0x2ae   :  { %v1640_v33 = vunpack.i.l.bf16 %v1639_v30  ;;  %v1641_v44 = vunpack.i.h.bf16 %v1639_v30 }
 0x2af   :  { %v328_v42 = vmul.f32 0.35355338, %v327_v31  ;;  %v1832_v31 = vmov 25  }
 0x2b0   :  { %508 = vmatpush.msrb.mxu2 %v1640_v33  ;;  %v1833_v33 = vmov 20  }
 0x2b1   :  { %v329_v45 = vsel %vm2095_vm11, %v328_v42, -1e+30  ;;  %v1835_v42 = vmov 21  }
 0x2b2   :  { %509 = vmatpush.msrb.mxu2 %v1641_v44  ;;  %v331_v62 = vsel %vm330_vm12, %v329_v45, -inf  ;;  %v1838_v44 = vmov 27  }
 0x2b3   :  { %v450_v0 = vpop.permute.xlu1 %449  ;;  %332 = vmax.xlane.f32.xlu1 %v331_v62  ;;  %v1841_v62 = vmov 23  }
 0x2b4   :  { %v452_v1 = vsel %vm2584_vm6, %v450_v0, %v447_v63 }
 0x2b5   :  { %v457_v3 = vsel %vm2583_vm8, %v455_v16, %v452_v1  ;;  %v1828_v16 = vmov 24   ;;  %v517_v29 = vpop.permute.xlu2 %516 }
 0x2b6   :  { %v458_v4 = vadd.f32 %v457_v3, %v417_v2  ;;  %1644 = vset.pattern.permute.xlu2 %v1828_v16 }
 0x2b8   :  { %v459_v5 = vmul.f32 0.35355338, %v458_v4 }
 0x2ba   :  { %v460_v6 = vsel %vm2095_vm11, %v459_v5, -1e+30 }
 0x2bb   :  { %v461_v7 = vsel %vm330_vm12, %v460_v6, -inf }
 0x2bc   :  { %462 = vmax.xlane.f32.xlu0 %v461_v7 }
 0x2cc   :  { %518 = vrot.lane.b32.xlu1 %v1992_v36, %s1821_s13 }
 0x2d0   :  { %1633 = vrot.lane.b32.xlu0 %v2053_v60, %s1823_s14 }
 0x2d8   :  { %648 = vrot.lane.b32.xlu0 %v1992_v36, %s1824_s15 }
 0x2e0   :  { %646 = vrot.lane.b32.xlu0 %v1988_v35, %s1824_s15 }
 0x2e8   :  { %549 = vperm.xlu0 %1642, %v2020_v46  }
 0x2f0   :  { %1647 = vset.pattern.permute.xlu0 %v1825_v10 }
 0x2f1   :  { %564 = vperm.xlu0 %1647, %v2020_v46  }
 0x2f9   :  { %1652 = vset.pattern.permute.xlu0 %v1826_v11 }
 0x2fa   :  { %699 = vperm.xlu0 %1652, %v2020_v46  }
 0x302   :  { %1657 = vset.pattern.permute.xlu0 %v1827_v12 }
 0x303   :  { %714 = vperm.xlu0 %1657, %v2020_v46  }
 0x30b   :  { %793 = vrot.lane.b32.xlu0 %v2010_v41, %s1801_s28 }
 0x30c   :  { %1669 = vset.pattern.permute.xlu0 %v1805_v39 }
 0x313   :  { %922 = vrot.lane.b32.xlu0 %v2004_v32, %s1803_s30 }
 0x31b   :  { %1184 = vrot.lane.b32.xlu0 %v2010_v41, %s1824_s15 }
 0x326   :  { %v333_v35 = vpop.xlane.xlu1 %332 }
 0x327   :  { %v334_v13 = vsub.f32 %v329_v45, %v333_v35  ;;  %v1839_v45 = vmov 30  }
 0x329   :  { %v335_v15 = vmul.f32 1.442695, %v334_v13 }
 0x32b   :  { %1736 = vpow2.f32 %v335_v15 }
 0x32f   :  { %v463_v17 = vpop.xlane.xlu0 %462 }
 0x330   :  { %v464_v18 = vsub.f32 %v460_v6, %v463_v17 }
 0x331   :  { %v2137_v19 = vpop.eup %1736 }
 0x332   :  { %v465_v20 = vmul.f32 1.442695, %v464_v18  ;;  %v337_v39 = vsel %vm330_vm12, %v2137_v19, 0.0 }
 0x333   :  { %338 = vadd.xlane.f32.xlu2 %v337_v39 }
 0x334   :  { %1738 = vpow2.f32 %v465_v20 }
 0x33a   :  { %v2141_v21 = vpop.eup %1738 }
 0x33b   :  { %v467_v22 = vsel %vm330_vm12, %v2141_v21, 0.0 }
 0x33c   :  { %468 = vadd.xlane.f32.xlu1 %v467_v22 }
 0x33e   :  { %v519_v27 = vpop.permute.xlu1 %518 }
 0x342   :  { %v1634_v24 = vpop.permute.xlu0 %1633 }
 0x343   :  { %v1635_v25 = vunpack.i.l.bf16 %v1634_v24  ;;  %v1636_v26 = vunpack.i.h.bf16 %v1634_v24 }
 0x345   :  { %378 = vmatpush.msra.mxu3 %v1635_v25 }
 0x347   :  { %379 = vmatpush.msra.mxu3 %v1636_v26 }
 0x349   :  { %1537 = vmatpush.xpose.msk.msrb.mxu3 %vm249_vm14, %v519_v27 }
 0x34a   :  { %v649_v28 = vpop.permute.xlu0 %648 }
 0x34b   :  { %644 = vrot.lane.b32.xlu2 %v1992_v36, %s1830_s16  ;;  %1541 = vmatpush.xpose.msk.msra.mxu2 %vm249_vm14, %v649_v28 }
 0x34d   :  { %1538 = vmatpush.xpose.msk.msrb.mxu3 %vm249_vm14, %v517_v29 }
 0x352   :  { %v647_v30 = vpop.permute.xlu0 %646 }
 0x353   :  { %679 = vperm.xlu2 %1644, %v2020_v46   ;;  %1542 = vmatpush.xpose.msk.msra.mxu2 %vm249_vm14, %v647_v30 }
 0x355   :  { %514 = vrot.lane.b32.xlu1 %v1992_v36, %s1831_s17  ;;  %v1836_v36 = vmov 26  }
 0x35a   :  { %v550_v30 = vpop.permute.xlu0 %549 }
 0x35b   :  { %1646 = vset.pattern.permute.xlu2 %v1832_v31 }
 0x35c   :  { %684 = vperm.xlu2 %1646, %v2020_v46  }
 0x35d   :  { %554 = vperm.xlu1 %1643, %v2020_v46  }
 0x364   :  { %1649 = vset.pattern.permute.xlu2 %v1833_v33 }
 0x365   :  { %569 = vperm.xlu2 %1649, %v2020_v46   ;;  %1645 = vset.pattern.permute.xlu1 %v1834_v37 }
 0x366   :  { %559 = vperm.xlu1 %1645, %v2020_v46  }
 0x36d   :  { %1651 = vset.pattern.permute.xlu2 %v1835_v42 }
 0x36e   :  { %574 = vperm.xlu2 %1651, %v2020_v46   ;;  %1648 = vset.pattern.permute.xlu1 %v1836_v36 }
 0x36f   :  { %689 = vperm.xlu1 %1648, %v2020_v46  }
 0x376   :  { %1654 = vset.pattern.permute.xlu2 %v1837_v43 }
 0x377   :  { %704 = vperm.xlu2 %1654, %v2020_v46   ;;  %1650 = vset.pattern.permute.xlu1 %v1838_v44 }
 0x378   :  { %694 = vperm.xlu1 %1650, %v2020_v46  }
 0x37f   :  { %1656 = vset.pattern.permute.xlu2 %v1839_v45 }
 0x380   :  { %709 = vperm.xlu2 %1656, %v2020_v46   ;;  %1653 = vset.pattern.permute.xlu1 %v1840_v61 }
 0x381   :  { %579 = vperm.xlu1 %1653, %v2020_v46  }
 0x388   :  { %1670 = vset.pattern.permute.xlu2 %v1809_v49 }
 0x389   :  { %1655 = vset.pattern.permute.xlu1 %v1841_v62 }
 0x38a   :  { %584 = vperm.xlu1 %1655, %v2020_v46  }
 0x392   :  { %1664 = vrot.lane.b32.xlu1 %v2053_v60, %s1842_s18 }
 0x393   :  { %1668 = vset.pattern.permute.xlu1 %v1806_v40 }
 0x39a   :  { %791 = vrot.lane.b32.xlu1 %v2004_v32, %s1801_s28 }
 0x3a6   :  { %v339_v63 = vpop.xlane.xlu2 %338 }
 0x3a7   :  { %1740 = vrcp.f32 %v339_v63  ;;  %v351_v3 = vand.u32 2147483648, %v339_v63  ;;  %v349_v46 = vand.u32 2147483647, %v339_v63  ;;  %vm345_vm9 = vweird.f32 %v339_v63 }
 0x3a9   :  { %v352_v6 = vor.u32 1.1754944e-38, %v351_v3  ;;  %vm350_vm13 = vcmp.eq.f32.partialorder %v349_v46, 8.507059e+37 }
 0x3ad   :  { %v1741_v0 = vpop.eup %1740 }
 0x3ae   :  { %v341_v1 = vmul.f32 %v1741_v0, %v339_v63  ;;  %vm346_vm7 = vweird.f32 %v1741_v0 }
 0x3af   :  { %v469_v2 = vpop.xlane.xlu1 %468  ;;  %vm347_vm10 = vmor %vm345_vm9, %vm346_vm7 }
 0x3b0   :  { %v342_v49 = vsub.f32 1.0, %v341_v1  ;;  %1742 = vrcp.f32 %v469_v2  ;;  %v481_v18 = vand.u32 2147483648, %v469_v2  ;;  %v479_v39 = vand.u32 2147483647, %v469_v2 }
 0x3b1   :  { %vm475_vm8 = vweird.f32 %v469_v2 }
 0x3b2   :  { %v343_v4 = vmul.f32 %v1741_v0, %v342_v49  ;;  %v482_v24 = vor.u32 1.1754944e-38, %v481_v18  ;;  %vm480_vm5 = vcmp.eq.f32.partialorder %v479_v39, 8.507059e+37 }
 0x3b4   :  { %v344_v5 = vadd.f32 %v1741_v0, %v343_v4 }
 0x3b6   :  { %v1743_v7 = vpop.eup %1742  ;;  %v348_v40 = vsel %vm347_vm10, %v1741_v0, %v344_v5  ;;  %v552_v0 = vsel %vm278_vm15, %v550_v30, 0.0 }
 0x3b7   :  { %v471_v35 = vmul.f32 %v1743_v7, %v469_v2  ;;  %v353_v13 = vsel %vm350_vm13, %v352_v6, %v348_v40  ;;  %vm476_vm0 = vweird.f32 %v1743_v7 }
 0x3b8   :  { %v354_v15 = vmul.f32 %v2137_v19, %v353_v13  ;;  %vm477_vm6 = vmor %vm475_vm8, %vm476_vm0  ;;  %v645_v19 = vpop.permute.xlu2 %644  ;;  %vm2588_vm0 = vcmp.eq.s32.totalorder %v2059_v8, 5 }
 0x3b9   :  { %v472_v17 = vsub.f32 1.0, %v471_v35  ;;  %v565_v35 = vpop.permute.xlu0 %564  ;;  %vm2591_vm8 = vmmov %vm2588_vm0 }
 0x3ba   :  { %1532 = vmatmul.msk.f32.vlgmr.msra.gmra.mxu3 %vm330_vm12, %v354_v15 }
 0x3bb   :  { %v473_v20 = vmul.f32 %v1743_v7, %v472_v17 }
 0x3bd   :  { %v474_v22 = vadd.f32 %v1743_v7, %v473_v20 }
 0x3bf   :  { %v478_v25 = vsel %vm477_vm6, %v1743_v7, %v474_v22  ;;  %vm2590_vm6 = vcmp.eq.s32.totalorder %v2059_v8, 7 }
 0x3c0   :  { %v483_v26 = vsel %vm480_vm5, %v482_v24, %v478_v25  ;;  %v680_v63 = vpop.permute.xlu2 %679  ;;  %vm2589_vm5 = vcmp.eq.s32.totalorder %v2059_v8, 6  ;;  %vm2593_vm13 = vmmov %vm2590_vm6 }
 0x3c1   :  { %v484_v27 = vmul.f32 %v2141_v21, %v483_v26  ;;  %v682_v4 = vsel %vm278_vm15, %v680_v63, 0.0  ;;  %vm2592_vm9 = vmmov %vm2589_vm5 }
 0x3c3   :  { %1536 = vmatmul.msk.f32.vlgmr.msrb.gmra.mxu2 %vm330_vm12, %v484_v27 }
 0x3c7   :  { %v515_v28 = vpop.permute.xlu1 %514 }
 0x3c8   :  { %1539 = vmatmul.msk.f32.vlgmr.msrb.gmra.mxu3 %vm249_vm14, %v515_v28  ;;  %v685_v49 = vpop.permute.xlu2 %684 }
 0x3c9   :  { %v687_v5 = vsel %vm285_vm1, %v685_v49, %v682_v4 }
 0x3cb   :  { %1543 = vmatmul.msk.f32.vlgmr.msra.gmra.mxu2 %vm249_vm14, %v645_v19 }
 0x3cf   :  { %v555_v29 = vpop.permute.xlu1 %554 }
 0x3d0   :  { %v557_v1 = vsel %vm285_vm1, %v555_v29, %v552_v0  ;;  %v570_v46 = vpop.permute.xlu2 %569  ;;  %v700_v29 = vpop.permute.xlu0 %699 }
 0x3d8   :  { %v560_v2 = vpop.permute.xlu1 %559  ;;  %v575_v17 = vpop.permute.xlu2 %574 }
 0x3d9   :  { %v562_v21 = vsel %vm291_vm2, %v560_v2, %v557_v1 }
 0x3da   :  { %v567_v13 = vsel %vm297_vm3, %v565_v35, %v562_v21 }
 0x3db   :  { %v572_v15 = vsel %vm303_vm4, %v570_v46, %v567_v13  ;;  %v715_v46 = vpop.permute.xlu0 %714 }
 0x3dc   :  { %v577_v20 = vsel %vm2588_vm0, %v575_v17, %v572_v15 }
 0x3e0   :  { %v705_v28 = vpop.permute.xlu2 %704 }
 0x3e1   :  { %v690_v3 = vpop.permute.xlu1 %689 }
 0x3e2   :  { %v692_v6 = vsel %vm291_vm2, %v690_v3, %v687_v5 }
 0x3e8   :  { %v710_v2 = vpop.permute.xlu2 %709 }
 0x3ea   :  { %v695_v7 = vpop.permute.xlu1 %694 }
 0x3eb   :  { %v697_v40 = vsel %vm297_vm3, %v695_v7, %v692_v6 }
 0x3ec   :  { %v702_v63 = vsel %vm303_vm4, %v700_v29, %v697_v40 }
 0x3ed   :  { %v707_v0 = vsel %vm2591_vm8, %v705_v28, %v702_v63 }
 0x3ee   :  { %v712_v49 = vsel %vm2592_vm9, %v710_v2, %v707_v0 }
 0x3ef   :  { %v717_v7 = vsel %vm2593_vm13, %v715_v46, %v712_v49 }
 0x3f3   :  { %v580_v18 = vpop.permute.xlu1 %579 }
 0x3f4   :  { %v582_v39 = vsel %vm2589_vm5, %v580_v18, %v577_v20  ;;  %v2242_v20 = vpop.f32.mrf.mxu1 }
 0x3fc   :  { %v585_v22 = vpop.permute.xlu1 %584 }
 0x3fd   :  { %v587_v24 = vsel %vm2590_vm6, %v585_v22, %v582_v39 }
 0x404   :  { %v1665_v25 = vpop.permute.xlu1 %1664 }
 0x405   :  { %v1666_v26 = vunpack.i.l.bf16 %v1665_v25  ;;  %v1667_v27 = vunpack.i.h.bf16 %v1665_v25 }
 0x407   :  { %768 = vmatpush.msra.mxu3 %v1666_v26 }
 0x409   :  { %769 = vmatpush.msra.mxu3 %v1667_v27  ;;  %v794_v27 = vpop.permute.xlu0 %793 }
 0x411   :  { %v923_v0 = vpop.permute.xlu0 %922 }
 0x43d   :  { %v2212_v19 = vpop.f32.mrf.mxu3 }
 0x446   :  { %v2214_v30 = vpop.f32.mrf.mxu2 }
 0x44b   :  { %v543_v1 = vpop.f32.mrf.mxu3 }
 0x44c   :  { %vm546_vm7 = vcmp.eq.f32.partialorder %v543_v1, 0.0 }
 0x44d   :  { %v547_v21 = vsel %vm546_vm7, -1000000.0, %v543_v1 }
 0x44e   :  { %v588_v3 = vadd.f32 %v587_v24, %v547_v21  ;;  %v673_v4 = vpop.f32.mrf.mxu2 }
 0x44f   :  { %vm676_vm10 = vcmp.eq.f32.partialorder %v673_v4, 0.0 }
 0x450   :  { %v589_v5 = vmul.f32 0.35355338, %v588_v3  ;;  %v677_v6 = vsel %vm676_vm10, -1000000.0, %v673_v4 }
 0x451   :  { %v718_v40 = vadd.f32 %v717_v7, %v677_v6 }
 0x452   :  { %v590_v35 = vsel %vm2095_vm11, %v589_v5, -1e+30 }
 0x453   :  { %v719_v13 = vmul.f32 0.35355338, %v718_v40  ;;  %v591_v15 = vsel %vm330_vm12, %v590_v35, -inf }
 0x454   :  { %592 = vmax.xlane.f32.xlu1 %v591_v15 }
 0x455   :  { %v720_v17 = vsel %vm2095_vm11, %v719_v13, -1e+30 }
 0x456   :  { %v721_v18 = vsel %vm330_vm12, %v720_v17, -inf }
 0x457   :  { %722 = vmax.xlane.f32.xlu2 %v721_v18 }
 0x46d   :  { %1054 = vrot.lane.b32.xlu1 %v2010_v41, %s1821_s13 }
 0x46f   :  { %1659 = vrot.lane.b32.xlu2 %v2053_v60, %s1843_s4  ;;  %v792_v60 = vpop.permute.xlu1 %791 }
 0x477   :  { %924 = vrot.lane.b32.xlu2 %v2010_v41, %s1803_s30 }
 0x47f   :  { %920 = vrot.lane.b32.xlu2 %v2010_v41, %s1802_s29 }
 0x487   :  { %1052 = vrot.lane.b32.xlu2 %v2004_v32, %s1821_s13 }
 0x48f   :  { %1180 = vrot.lane.b32.xlu2 %v2010_v41, %s1830_s16 }
 0x497   :  { %835 = vperm.xlu2 %1670, %v2242_v20  }
 0x49f   :  { %1672 = vset.pattern.permute.xlu2 %v1807_v47 }
 0x4a0   :  { %845 = vperm.xlu2 %1672, %v2242_v20  }
 0x4a8   :  { %1675 = vset.pattern.permute.xlu2 %v1818_v58 }
 0x4a9   :  { %860 = vperm.xlu2 %1675, %v2242_v20  }
 0x4b1   :  { %1677 = vset.pattern.permute.xlu2 %v1808_v48 }
 0x4b2   :  { %960 = vperm.xlu2 %1677, %v2242_v20  }
 0x4ba   :  { %1680 = vset.pattern.permute.xlu2 %v1829_v23 }
 0x4bb   :  { %1090 = vperm.xlu2 %1680, %v2242_v20  }
 0x4c3   :  { %1682 = vset.pattern.permute.xlu2 %v1834_v37 }
 0x4c4   :  { %1095 = vperm.xlu2 %1682, %v2242_v20  }
 0x4c7   :  { %v593_v47 = vpop.xlane.xlu1 %592 }
 0x4c8   :  { %v594_v39 = vsub.f32 %v590_v35, %v593_v47 }
 0x4ca   :  { %v595_v22 = vmul.f32 1.442695, %v594_v39  ;;  %v723_v24 = vpop.xlane.xlu2 %722 }
 0x4cb   :  { %v724_v58 = vsub.f32 %v720_v17, %v723_v24 }
 0x4cc   :  { %1744 = vpow2.f32 %v595_v22  ;;  %1685 = vset.pattern.permute.xlu2 %v1810_v50 }
 0x4cd   :  { %v725_v48 = vmul.f32 1.442695, %v724_v58  ;;  %980 = vperm.xlu2 %1685, %v2242_v20  }
 0x4cf   :  { %1746 = vpow2.f32 %v725_v48 }
 0x4d2   :  { %v2257_v23 = vpop.eup %1744  ;;  %v1660_v25 = vpop.permute.xlu2 %1659 }
 0x4d3   :  { %v597_v37 = vsel %vm330_vm12, %v2257_v23, 0.0  ;;  %v1661_v26 = vunpack.i.l.bf16 %v1660_v25  ;;  %v1662_v29 = vunpack.i.h.bf16 %v1660_v25 }
 0x4d4   :  { %598 = vadd.xlane.f32.xlu0 %v597_v37 }
 0x4d5   :  { %v2261_v28 = vpop.eup %1746  ;;  %1687 = vset.pattern.permute.xlu2 %v1817_v57  ;;  %638 = vmatpush.msrb.mxu1 %v1661_v26 }
 0x4d6   :  { %985 = vperm.xlu2 %1687, %v2242_v20   ;;  %v727_v50 = vsel %vm330_vm12, %v2261_v28, 0.0 }
 0x4d7   :  { %639 = vmatpush.msrb.mxu1 %v1662_v29  ;;  %728 = vadd.xlane.f32.xlu1 %v727_v50 }
 0x4d9   :  { %1545 = vmatpush.xpose.msk.msra.mxu1 %vm249_vm14, %v794_v27 }
 0x4da   :  { %v925_v63 = vpop.permute.xlu2 %924 }
 0x4db   :  { %1549 = vmatpush.xpose.msk.msrb.mxu3 %vm249_vm14, %v925_v63 }
 0x4dd   :  { %1546 = vmatpush.xpose.msk.msra.mxu1 %vm249_vm14, %v792_v60 }
 0x4de   :  { %1690 = vset.pattern.permute.xlu2 %v1840_v61 }
 0x4df   :  { %1115 = vperm.xlu2 %1690, %v2242_v20   ;;  %1550 = vmatpush.xpose.msk.msrb.mxu3 %vm249_vm14, %v923_v0 }
 0x4e7   :  { %1692 = vset.pattern.permute.xlu2 %v1828_v16 }
 0x4e8   :  { %1215 = vperm.xlu2 %1692, %v2242_v20   ;;  %1050 = vrot.lane.b32.xlu0 %v2010_v41, %s1831_s17 }
 0x4f0   :  { %1695 = vset.pattern.permute.xlu2 %v1838_v44  ;;  %1182 = vrot.lane.b32.xlu1 %v2004_v32, %s1824_s15 }
 0x4f1   :  { %830 = vperm.xlu0 %1669, %v2242_v20   ;;  %1230 = vperm.xlu2 %1695, %v2242_v20  }
 0x4f8   :  { %825 = vperm.xlu1 %1668, %v2242_v20  }
 0x4f9   :  { %1674 = vset.pattern.permute.xlu0 %v1815_v55  ;;  %1697 = vset.pattern.permute.xlu2 %v1837_v43  ;;  %v921_v55 = vpop.permute.xlu2 %920 }
 0x4fa   :  { %855 = vperm.xlu0 %1674, %v2242_v20   ;;  %1240 = vperm.xlu2 %1697, %v2242_v20  }
 0x500   :  { %1671 = vset.pattern.permute.xlu1 %v1812_v52 }
 0x501   :  { %840 = vperm.xlu1 %1671, %v2242_v20   ;;  %v1053_v1 = vpop.permute.xlu2 %1052 }
 0x502   :  { %1679 = vset.pattern.permute.xlu0 %v1811_v51  ;;  %v1055_v51 = vpop.permute.xlu1 %1054 }
 0x503   :  { %965 = vperm.xlu0 %1679, %v2242_v20  }
 0x509   :  { %1673 = vset.pattern.permute.xlu1 %v1813_v53  ;;  %v1181_v6 = vpop.permute.xlu2 %1180 }
 0x50a   :  { %850 = vperm.xlu1 %1673, %v2242_v20  }
 0x50b   :  { %1684 = vset.pattern.permute.xlu0 %v1825_v10 }
 0x50c   :  { %1100 = vperm.xlu0 %1684, %v2242_v20  }
 0x511   :  { %v836_v13 = vpop.permute.xlu2 %835 }
 0x512   :  { %1676 = vset.pattern.permute.xlu1 %v1804_v38  ;;  %v1185_v38 = vpop.permute.xlu0 %1184 }
 0x513   :  { %955 = vperm.xlu1 %1676, %v2242_v20  }
 0x514   :  { %1689 = vset.pattern.permute.xlu0 %v1819_v59 }
 0x515   :  { %990 = vperm.xlu0 %1689, %v2242_v20  }
 0x519   :  { %v846_v60 = vpop.permute.xlu2 %845 }
 0x51b   :  { %1678 = vset.pattern.permute.xlu1 %v1822_v9 }
 0x51c   :  { %1085 = vperm.xlu1 %1678, %v2242_v20  }
 0x51d   :  { %1694 = vset.pattern.permute.xlu0 %v1836_v36 }
 0x51e   :  { %1225 = vperm.xlu0 %1694, %v2242_v20  }
 0x521   :  { %v861_v39 = vpop.permute.xlu2 %860 }
 0x524   :  { %1681 = vset.pattern.permute.xlu1 %v1814_v54 }
 0x525   :  { %970 = vperm.xlu1 %1681, %v2242_v20  }
 0x526   :  { %1699 = vset.pattern.permute.xlu0 %v1827_v12 }
 0x527   :  { %1250 = vperm.xlu0 %1699, %v2242_v20  }
 0x529   :  { %v961_v24 = vpop.permute.xlu2 %960 }
 0x52d   :  { %1683 = vset.pattern.permute.xlu1 %v1816_v56 }
 0x52e   :  { %975 = vperm.xlu1 %1683, %v2242_v20  }
 0x531   :  { %v1091_v48 = vpop.permute.xlu2 %1090 }
 0x536   :  { %1686 = vset.pattern.permute.xlu1 %v1833_v33 }
 0x537   :  { %1105 = vperm.xlu1 %1686, %v2242_v20  }
 0x539   :  { %v1096_v25 = vpop.permute.xlu2 %1095 }
 0x53f   :  { %1688 = vset.pattern.permute.xlu1 %v1835_v42 }
 0x540   :  { %1110 = vperm.xlu1 %1688, %v2242_v20  }
 0x541   :  { %v981_v26 = vpop.permute.xlu2 %980 }
 0x547   :  { %v599_v52 = vpop.xlane.xlu0 %598 }
 0x548   :  { %1748 = vrcp.f32 %v599_v52  ;;  %1691 = vset.pattern.permute.xlu1 %v1841_v62  ;;  %v611_v9 = vand.u32 2147483648, %v599_v52  ;;  %v609_v16 = vand.u32 2147483647, %v599_v52  ;;  %vm605_vm5 = vweird.f32 %v599_v52 }
 0x549   :  { %1120 = vperm.xlu1 %1691, %v2242_v20   ;;  %v986_v29 = vpop.permute.xlu2 %985 }
 0x54a   :  { %v729_v53 = vpop.xlane.xlu1 %728  ;;  %v612_v43 = vor.u32 1.1754944e-38, %v611_v9  ;;  %vm610_vm7 = vcmp.eq.f32.partialorder %v609_v16, 8.507059e+37 }
 0x54b   :  { %1750 = vrcp.f32 %v729_v53  ;;  %v741_v36 = vand.u32 2147483648, %v729_v53  ;;  %v739_v61 = vand.u32 2147483647, %v729_v53  ;;  %vm735_vm9 = vweird.f32 %v729_v53 }
 0x54d   :  { %v742_v21 = vor.u32 1.1754944e-38, %v741_v36  ;;  %vm740_vm13 = vcmp.eq.f32.partialorder %v739_v61, 8.507059e+37 }
 0x54e   :  { %v1749_v54 = vpop.eup %1748 }
 0x54f   :  { %v601_v56 = vmul.f32 %v1749_v54, %v599_v52  ;;  %vm606_vm0 = vweird.f32 %v1749_v54 }
 0x550   :  { %vm607_vm6 = vmor %vm605_vm5, %vm606_vm0  ;;  %vm2594_vm0 = vcmp.eq.s32.totalorder %v2059_v8, 5  ;;  %vm2595_vm5 = vcmp.eq.s32.totalorder %v2059_v8, 6 }
 0x551   :  { %v1751_v57 = vpop.eup %1750  ;;  %v602_v59 = vsub.f32 1.0, %v601_v56  ;;  %1693 = vset.pattern.permute.xlu1 %v1832_v31  ;;  %v1116_v0 = vpop.permute.xlu2 %1115 }
 0x552   :  { %v731_v10 = vmul.f32 %v1751_v57, %v729_v53  ;;  %1220 = vperm.xlu1 %1693, %v2242_v20   ;;  %vm736_vm8 = vweird.f32 %v1751_v57 }
 0x553   :  { %v603_v12 = vmul.f32 %v1749_v54, %v602_v59  ;;  %vm737_vm10 = vmor %vm735_vm9, %vm736_vm8  ;;  %vm2596_vm8 = vcmp.eq.s32.totalorder %v2059_v8, 7 }
 0x554   :  { %v732_v33 = vsub.f32 1.0, %v731_v10  ;;  %vm2598_vm9 = vmmov %vm2594_vm0 }
 0x555   :  { %v604_v42 = vadd.f32 %v1749_v54, %v603_v12 }
 0x556   :  { %v733_v44 = vmul.f32 %v1751_v57, %v732_v33 }
 0x557   :  { %v608_v62 = vsel %vm607_vm6, %v1749_v54, %v604_v42 }
 0x558   :  { %v734_v31 = vadd.f32 %v1751_v57, %v733_v44  ;;  %v613_v2 = vsel %vm610_vm7, %v612_v43, %v608_v62  ;;  %vm2597_vm7 = vmmov %vm2594_vm0 }
 0x559   :  { %v614_v49 = vmul.f32 %v2257_v23, %v613_v2  ;;  %v1216_v53 = vpop.permute.xlu2 %1215 }
 0x55a   :  { %v738_v3 = vsel %vm737_vm10, %v1751_v57, %v734_v31  ;;  %1696 = vset.pattern.permute.xlu1 %v1826_v11  ;;  %v1051_v5 = vpop.permute.xlu0 %1050  ;;  %v1218_v2 = vsel %vm278_vm15, %v1216_v53, 0.0  ;;  %vm2600_vm10 = vmmov %vm2595_vm5 }
 0x55b   :  { %v743_v4 = vsel %vm740_vm13, %v742_v21, %v738_v3  ;;  %1235 = vperm.xlu1 %1696, %v2242_v20   ;;  %1540 = vmatmul.msk.f32.vlgmr.msrb.gmra.mxu1 %vm330_vm12, %v614_v49  ;;  %vm2601_vm13 = vmmov %vm2596_vm8 }
 0x55c   :  { %1553 = vmatpush.xpose.msk.msrb.mxu1 %vm249_vm14, %v1055_v51  ;;  %v744_v46 = vmul.f32 %v2261_v28, %v743_v4 }
 0x55e   :  { %1544 = vmatmul.msk.f32.vlgmr.msra.gmra.mxu3 %vm330_vm12, %v744_v46 }
 0x55f   :  { %1557 = vmatpush.xpose.msk.msra.mxu3 %vm249_vm14, %v1185_v38 }
 0x560   :  { %1554 = vmatpush.xpose.msk.msrb.mxu1 %vm249_vm14, %v1053_v1 }
 0x561   :  { %v1231_v21 = vpop.permute.xlu2 %1230 }
 0x562   :  { %v1183_v7 = vpop.permute.xlu1 %1182 }
 0x563   :  { %1698 = vset.pattern.permute.xlu1 %v1839_v45  ;;  %1547 = vmatmul.msk.f32.vlgmr.msra.gmra.mxu1 %vm249_vm14, %v2010_v41  ;;  %v831_v40 = vpop.permute.xlu0 %830 }
 0x564   :  { %1558 = vmatpush.xpose.msk.msra.mxu3 %vm249_vm14, %v1183_v7  ;;  %1245 = vperm.xlu1 %1698, %v2242_v20  }
 0x566   :  { %1551 = vmatmul.msk.f32.vlgmr.msrb.gmra.mxu3 %vm249_vm14, %v921_v55 }
 0x56a   :  { %v826_v11 = vpop.permute.xlu1 %825 }
 0x56b   :  { %v828_v35 = vsel %vm278_vm15, %v826_v11, 0.0  ;;  %1555 = vmatmul.msk.f32.vlgmr.msrb.gmra.mxu1 %vm249_vm14, %v1051_v5 }
 0x56c   :  { %v833_v45 = vsel %vm285_vm1, %v831_v40, %v828_v35  ;;  %v856_v27 = vpop.permute.xlu0 %855 }
 0x56d   :  { %v838_v15 = vsel %vm291_vm2, %v836_v13, %v833_v45 }
 0x56e   :  { %1559 = vmatmul.msk.f32.vlgmr.msra.gmra.mxu3 %vm249_vm14, %v1181_v6 }
 0x573   :  { %v841_v17 = vpop.permute.xlu1 %840 }
 0x574   :  { %v843_v18 = vsel %vm297_vm3, %v841_v17, %v838_v15 }
 0x575   :  { %v966_v50 = vpop.permute.xlu0 %965  ;;  %v848_v55 = vsel %vm303_vm4, %v846_v60, %v843_v18 }
 0x57c   :  { %v851_v20 = vpop.permute.xlu1 %850 }
 0x57d   :  { %v853_v57 = vsel %vm2594_vm0, %v851_v20, %v848_v55 }
 0x57e   :  { %v1101_v38 = vpop.permute.xlu0 %1100  ;;  %v858_v12 = vsel %vm2595_vm5, %v856_v27, %v853_v57 }
 0x57f   :  { %v863_v62 = vsel %vm2596_vm8, %v861_v39, %v858_v12 }
 0x585   :  { %v956_v47 = vpop.permute.xlu1 %955 }
 0x586   :  { %v958_v54 = vsel %vm278_vm15, %v956_v47, 0.0 }
 0x587   :  { %v963_v59 = vsel %vm285_vm1, %v961_v24, %v958_v54  ;;  %v991_v9 = vpop.permute.xlu0 %990 }
 0x588   :  { %v968_v16 = vsel %vm291_vm2, %v966_v50, %v963_v59  ;;  %v1700_v59 = vpack.i.bf16 %v2004_v32, %v2010_v41 }
 0x58e   :  { %v1086_v22 = vpop.permute.xlu1 %1085 }
 0x58f   :  { %v1088_v56 = vsel %vm278_vm15, %v1086_v22, 0.0  ;;  %vm2599_vm15 = vmmov %vm2595_vm5 }
 0x590   :  { %v1093_v10 = vsel %vm285_vm1, %v1091_v48, %v1088_v56  ;;  %v1226_v7 = vpop.permute.xlu0 %1225  ;;  %vm2603_vm5 = vmmov %vm2597_vm7 }
 0x591   :  { %v1098_v42 = vsel %vm291_vm2, %v1096_v25, %v1093_v10  ;;  %v1241_v25 = vpop.permute.xlu2 %1240 }
 0x592   :  { %v1103_v49 = vsel %vm297_vm3, %v1101_v38, %v1098_v42 }
 0x597   :  { %v971_v58 = vpop.permute.xlu1 %970 }
 0x598   :  { %v973_v36 = vsel %vm297_vm3, %v971_v58, %v968_v16 }
 0x599   :  { %v1251_v38 = vpop.permute.xlu0 %1250 }
 0x5a0   :  { %v976_v23 = vpop.permute.xlu1 %975 }
 0x5a1   :  { %v978_v44 = vsel %vm303_vm4, %v976_v23, %v973_v36 }
 0x5a2   :  { %v983_v3 = vsel %vm2597_vm7, %v981_v26, %v978_v44 }
 0x5a3   :  { %v988_v13 = vsel %vm2599_vm15, %v986_v29, %v983_v3 }
 0x5a9   :  { %v1106_v37 = vpop.permute.xlu1 %1105 }
 0x5aa   :  { %v1108_v4 = vsel %vm303_vm4, %v1106_v37, %v1103_v49 }
 0x5b2   :  { %v1111_v28 = vpop.permute.xlu1 %1110 }
 0x5b3   :  { %v1113_v6 = vsel %vm2598_vm9, %v1111_v28, %v1108_v4 }
 0x5b4   :  { %v1118_v15 = vsel %vm2600_vm10, %v1116_v0, %v1113_v6 }
 0x5bb   :  { %v1121_v63 = vpop.permute.xlu1 %1120 }
 0x5bc   :  { %v1123_v18 = vsel %vm2601_vm13, %v1121_v63, %v1118_v15 }
 0x5c4   :  { %v1221_v52 = vpop.permute.xlu1 %1220 }
 0x5c5   :  { %v1223_v46 = vsel %vm285_vm1, %v1221_v52, %v1218_v2 }
 0x5c6   :  { %v1228_v40 = vsel %vm291_vm2, %v1226_v7, %v1223_v46  ;;  %vm2602_vm2 = vmmov %vm2596_vm8 }
 0x5c7   :  { %v1233_v60 = vsel %vm297_vm3, %v1231_v21, %v1228_v40  ;;  %v993_v22 = vsel %vm2602_vm2, %v991_v9, %v988_v13  ;;  %vm2604_vm3 = vmmov %vm2600_vm10 }
 0x5cd   :  { %v1236_v1 = vpop.permute.xlu1 %1235 }
 0x5ce   :  { %v1238_v24 = vsel %vm303_vm4, %v1236_v1, %v1233_v60 }
 0x5cf   :  { %v1243_v26 = vsel %vm2603_vm5, %v1241_v25, %v1238_v24 }
 0x5d6   :  { %v1246_v48 = vpop.permute.xlu1 %1245 }
 0x5d7   :  { %v1248_v28 = vsel %vm2604_vm3, %v1246_v48, %v1243_v26 }
 0x5d8   :  { %v2342_v51 = vpop.f32.mrf.mxu1 }
 0x5e0   :  { %v818_v33 = vpop.f32.mrf.mxu1 }
 0x5e1   :  { %vm821_vm6 = vcmp.eq.f32.partialorder %v818_v33, 0.0  ;;  %v2364_v43 = vpop.f32.mrf.mxu3 }
 0x5e2   :  { %v822_v61 = vsel %vm821_vm6, -1000000.0, %v818_v33  ;;  %vm2605_vm6 = vmmov %vm2602_vm2 }
 0x5e3   :  { %v864_v31 = vadd.f32 %v863_v62, %v822_v61  ;;  %v1253_v53 = vsel %vm2605_vm6, %v1251_v38, %v1248_v28 }
 0x5e5   :  { %v865_v5 = vmul.f32 0.35355338, %v864_v31 }
 0x5e7   :  { %v866_v11 = vsel %vm2095_vm11, %v865_v5, -1e+30 }
 0x5e8   :  { %v1079_v35 = vpop.f32.mrf.mxu1  ;;  %v867_v45 = vsel %vm330_vm12, %v866_v11, -inf }
 0x5e9   :  { %vm1082_vm1 = vcmp.eq.f32.partialorder %v1079_v35, 0.0  ;;  %v949_v17 = vpop.f32.mrf.mxu3  ;;  %868 = vmax.xlane.f32.xlu2 %v867_v45 }
 0x5ea   :  { %v1083_v20 = vsel %vm1082_vm1, -1000000.0, %v1079_v35  ;;  %vm952_vm0 = vcmp.eq.f32.partialorder %v949_v17, 0.0 }
 0x5eb   :  { %v1124_v47 = vadd.f32 %v1123_v18, %v1083_v20  ;;  %v953_v39 = vsel %vm952_vm0, -1000000.0, %v949_v17  ;;  %v1326_v18 = vld [vmem:[%s2574_s5 + $0x8] sm:$0xff]  ;;  %v1325_v20 = vld [vmem:[%s2574_s5] sm:$0xff] }
 0x5ec   :  { %v994_v58 = vadd.f32 %v993_v22, %v953_v39 }
 0x5ed   :  { %v1125_v23 = vmul.f32 0.35355338, %v1124_v47 }
 0x5ee   :  { %v995_v37 = vmul.f32 0.35355338, %v994_v58 }
 0x5ef   :  { %v1126_v27 = vsel %vm2095_vm11, %v1125_v23, -1e+30 }
 0x5f0   :  { %v1127_v29 = vsel %vm330_vm12, %v1126_v27, -inf  ;;  %v996_v50 = vsel %vm2095_vm11, %v995_v37, -1e+30 }
 0x5f1   :  { %v1209_v63 = vpop.f32.mrf.mxu3  ;;  %1128 = vmax.xlane.f32.xlu0 %v1127_v29  ;;  %v997_v0 = vsel %vm330_vm12, %v996_v50, -inf }
 0x5f2   :  { %vm1212_vm4 = vcmp.eq.f32.partialorder %v1209_v63, 0.0  ;;  %998 = vmax.xlane.f32.xlu1 %v997_v0 }
 0x5f3   :  { %v1213_v52 = vsel %vm1212_vm4, -1000000.0, %v1209_v63 }
 0x5f4   :  { %v1254_v54 = vadd.f32 %v1253_v53, %v1213_v52 }
 0x5f6   :  { %v1255_v55 = vmul.f32 0.35355338, %v1254_v54 }
 0x5f8   :  { %v1256_v56 = vsel %vm2095_vm11, %v1255_v55, -1e+30 }
 0x5f9   :  { %v1257_v57 = vsel %vm330_vm12, %v1256_v56, -inf }
 0x5fa   :  { %1258 = vmax.xlane.f32.xlu2 %v1257_v57 }
 0x612   :  { %1701 = vrot.lane.b32.xlu2 %v1700_v59, %s1823_s14 }
 0x65c   :  { %v869_v9 = vpop.xlane.xlu2 %868 }
 0x65d   :  { %v870_v10 = vsub.f32 %v866_v11, %v869_v9 }
 0x65f   :  { %v871_v12 = vmul.f32 1.442695, %v870_v10 }
 0x661   :  { %1752 = vpow2.f32 %v871_v12 }
 0x664   :  { %v1129_v16 = vpop.xlane.xlu0 %1128 }
 0x665   :  { %v1130_v8 = vsub.f32 %v1126_v27, %v1129_v16  ;;  %v999_v33 = vpop.xlane.xlu1 %998 }
 0x666   :  { %v1000_v42 = vsub.f32 %v996_v50, %v999_v33 }
 0x667   :  { %v2417_v36 = vpop.eup %1752  ;;  %v1131_v34 = vmul.f32 1.442695, %v1130_v8 }
 0x668   :  { %v1001_v44 = vmul.f32 1.442695, %v1000_v42  ;;  %v873_v61 = vsel %vm330_vm12, %v2417_v36, 0.0 }
 0x669   :  { %1754 = vpow2.f32 %v1131_v34  ;;  %874 = vadd.xlane.f32.xlu1 %v873_v61 }
 0x66a   :  { %1756 = vpow2.f32 %v1001_v44 }
 0x66d   :  { %v1259_v32 = vpop.xlane.xlu2 %1258 }
 0x66e   :  { %v1260_v41 = vsub.f32 %v1256_v56, %v1259_v32 }
 0x66f   :  { %v2421_v62 = vpop.eup %1754 }
 0x670   :  { %v2423_v1 = vpop.eup %1756  ;;  %v1261_v31 = vmul.f32 1.442695, %v1260_v41  ;;  %v1133_v2 = vsel %vm330_vm12, %v2421_v62, 0.0 }
 0x671   :  { %1134 = vadd.xlane.f32.xlu1 %v1133_v2  ;;  %v1003_v21 = vsel %vm330_vm12, %v2423_v1, 0.0 }
 0x672   :  { %1758 = vpow2.f32 %v1261_v31  ;;  %1004 = vadd.xlane.f32.xlu2 %v1003_v21 }
 0x675   :  { %v1702_v49 = vpop.permute.xlu2 %1701 }
 0x676   :  { %v1703_v3 = vunpack.i.l.bf16 %v1702_v49  ;;  %v1704_v46 = vunpack.i.h.bf16 %v1702_v49 }
 0x678   :  { %v2429_v4 = vpop.eup %1758  ;;  %914 = vmatpush.msrb.mxu2 %v1703_v3 }
 0x679   :  { %v1263_v5 = vsel %vm330_vm12, %v2429_v4, 0.0 }
 0x67a   :  { %1264 = vadd.xlane.f32.xlu0 %v1263_v5  ;;  %915 = vmatpush.msrb.mxu2 %v1704_v46 }
 0x68a   :  { %1706 = vrot.lane.b32.xlu1 %v1700_v59, %s1820_s1  ;;  %1716 = vrot.lane.b32.xlu2 %v1700_v59, %s1842_s18  ;;  %s1847_s18 = smov [#allocation2]  }
 0x68e   :  { %1711 = vrot.lane.b32.xlu0 %v1700_v59, %s1843_s4  ;;  %s1848_s4 = smov 128  }
 0x692   :  { %779 = vrot.lane.b32.xlu1 %v2342_v51, %s1844_s19  ;;  %783 = vrot.lane.b32.xlu2 %v2364_v43, %s1845_s20  ;;  %v1328_v51 = vld [vmem:[%s2574_s5 + $0x18] sm:$0xff] }
 0x693   :  { %1347 = vmatpush.msra.mxu1 %v1328_v51 }
 0x696   :  { %775 = vrot.lane.b32.xlu0 %v2214_v30, %s1846_s21  ;;  %v1327_v30 = vld [vmem:[%s2574_s5 + $0x10] sm:$0xff] }
 0x697   :  { %1348 = vmatpush.msra.mxu1 %v1327_v30 }
 0x699   :  { %1349 = vmatpush.msra.mxu1 %v1326_v18 }
 0x69b   :  { %1350 = vmatpush.msra.mxu1 %v1325_v20 }
 0x6dc   :  { %v875_v6 = vpop.xlane.xlu1 %874 }
 0x6dd   :  { %1760 = vrcp.f32 %v875_v6  ;;  %v887_v43 = vand.u32 2147483648, %v875_v6  ;;  %v885_v15 = vand.u32 2147483647, %v875_v6  ;;  %vm881_vm8 = vweird.f32 %v875_v6 }
 0x6df   :  { %v888_v47 = vor.u32 1.1754944e-38, %v887_v43  ;;  %vm886_vm9 = vcmp.eq.f32.partialorder %v885_v15, 8.507059e+37 }
 0x6e3   :  { %v1761_v7 = vpop.eup %1760 }
 0x6e4   :  { %v877_v11 = vmul.f32 %v1761_v7, %v875_v6  ;;  %v2442_v40 = vpop.xlane.xlu1 %1134  ;;  %vm882_vm11 = vweird.f32 %v1761_v7 }
 0x6e5   :  { %1762 = vrcp.f32 %v2442_v40  ;;  %v1005_v35 = vpop.xlane.xlu2 %1004  ;;  %vm883_vm7 = vmor %vm881_vm8, %vm882_vm11  ;;  %v1147_v56 = vand.u32 2147483648, %v2442_v40  ;;  %vm1141_vm0 = vweird.f32 %v2442_v40  ;;  %v1145_v59 = vand.u32 2147483647, %v2442_v40 }
 0x6e6   :  { %v878_v13 = vsub.f32 1.0, %v877_v11  ;;  %1764 = vrcp.f32 %v1005_v35  ;;  %v1017_v0 = vand.u32 2147483648, %v1005_v35  ;;  %vm1011_vm10 = vweird.f32 %v1005_v35 }
 0x6e7   :  { %v1015_v52 = vand.u32 2147483647, %v1005_v35  ;;  %vm1146_vm4 = vcmp.eq.f32.partialorder %v1145_v59, 8.507059e+37 }
 0x6e8   :  { %v879_v45 = vmul.f32 %v1761_v7, %v878_v13  ;;  %v1018_v57 = vor.u32 1.1754944e-38, %v1017_v0  ;;  %v1421_v0 = vld [vmem:[%s2577_s8 + $0x18] sm:$0xff] }
 0x6e9   :  { %vm1016_vm2 = vcmp.eq.f32.partialorder %v1015_v52, 8.507059e+37  ;;  %v1419_v52 = vld [vmem:[%s2577_s8 + $0x8] sm:$0xff] }
 0x6ea   :  { %v880_v17 = vadd.f32 %v1761_v7, %v879_v45 }
 0x6eb   :  { %v1763_v60 = vpop.eup %1762 }
 0x6ec   :  { %v1765_v39 = vpop.eup %1764  ;;  %v884_v22 = vsel %vm883_vm7, %v1761_v7, %v880_v17  ;;  %v1137_v23 = vmul.f32 %v1763_v60, %v2442_v40  ;;  %vm1142_vm13 = vweird.f32 %v1763_v60  ;;  %vm788_vm7 = vcmask 195584   ;;  %v1772_v17 = vld [vmem:[%s2569_s0 + $0x8] sm:$0xff] }
 0x6ed   :  { %v889_v24 = vsel %vm886_vm9, %v888_v47, %v884_v22  ;;  %v1007_v58 = vmul.f32 %v1765_v39, %v1005_v35  ;;  %v1265_v48 = vpop.xlane.xlu0 %1264  ;;  %vm1012_vm15 = vweird.f32 %v1765_v39  ;;  %vm2463_vm5 = vmor %vm1141_vm0, %vm1142_vm13  ;;  %v1717_v42 = vpop.permute.xlu2 %1716  ;;  %vm2608_vm9 = vcmask 261120  }
 0x6ee   :  { %1766 = vrcp.f32 %v1265_v48  ;;  %v890_v37 = vmul.f32 %v2417_v36, %v889_v24  ;;  %v1138_v26 = vsub.f32 1.0, %v1137_v23  ;;  %vm1013_vm1 = vmor %vm1011_vm10, %vm1012_vm15  ;;  %v1148_v36 = vor.u32 1.1754944e-38, %v1147_v56 }
 0x6ef   :  { %v1008_v25 = vsub.f32 1.0, %v1007_v58  ;;  %v1277_v34 = vand.u32 2147483648, %v1265_v48  ;;  %vm1271_vm6 = vweird.f32 %v1265_v48  ;;  %v1275_v61 = vand.u32 2147483647, %v1265_v48  ;;  %vm2609_vm15 = vmmov %vm2608_vm9 }
 0x6f0   :  { %1548 = vmatmul.msk.f32.vlgmr.msrb.gmra.mxu2 %vm330_vm12, %v890_v37  ;;  %v1139_v50 = vmul.f32 %v1763_v60, %v1138_v26  ;;  %v1718_v2 = vunpack.i.l.bf16 %v1717_v42  ;;  %v1719_v46 = vunpack.i.h.bf16 %v1717_v42  ;;  %vm2610_vm10 = vmmov %vm2608_vm9 }
 0x6f1   :  { %v1009_v27 = vmul.f32 %v1765_v39, %v1008_v25  ;;  %v1278_v3 = vor.u32 1.1754944e-38, %v1277_v34  ;;  %vm1276_vm8 = vcmp.eq.f32.partialorder %v1275_v61, 8.507059e+37  ;;  %v1464_v61 = vld [vmem:[%s2579_s10 + $0x38] sm:$0xff] }
 0x6f2   :  { %v1140_v53 = vadd.f32 %v1763_v60, %v1139_v50  ;;  %1484 = vmatpush.msrb.mxu3 %v1464_v61 }
 0x6f3   :  { %v1010_v63 = vadd.f32 %v1765_v39, %v1009_v27 }
 0x6f4   :  { %v1767_v28 = vpop.eup %1766  ;;  %v1144_v8 = vsel %vm2463_vm5, %v1763_v60, %v1140_v53  ;;  %v1418_v53 = vld [vmem:[%s2577_s8] sm:$0xff] }
 0x6f5   :  { %v1267_v29 = vmul.f32 %v1767_v28, %v1265_v48  ;;  %v1014_v54 = vsel %vm1013_vm1, %v1765_v39, %v1010_v63  ;;  %vm1272_vm3 = vweird.f32 %v1767_v28  ;;  %v1149_v31 = vsel %vm1146_vm4, %v1148_v36, %v1144_v8  ;;  %v784_v51 = vpop.permute.xlu2 %783  ;;  %vm2611_vm1 = vmmov %vm2608_vm9  ;;  %v1722_v8 = vld [vmem:[%s2575_s6] ss:$0 sm:$0xff] }
 0x6f6   :  { %v1019_v12 = vsel %vm1016_vm2, %v1018_v57, %v1014_v54  ;;  %vm1273_vm11 = vmor %vm1271_vm6, %vm1272_vm3  ;;  %v1150_v6 = vmul.f32 %v2421_v62, %v1149_v31  ;;  %v1723_v36 = vld [vmem:[%s2576_s7] ss:$0 sm:$0xff]  ;;  %vm1469_vm3 = vcmask 523264  }
 0x6f7   :  { %v1268_v38 = vsub.f32 1.0, %v1267_v29  ;;  %v1020_v41 = vmul.f32 %v2423_v1, %v1019_v12  ;;  %v1773_v29 = vld [vmem:[%s2569_s0 + $0x18] sm:$0xff]  ;;  %vm2613_vm2 = vmmov %vm2611_vm1  ;;  %v1461_v31 = vld [vmem:[%s2579_s10 + $0x20] sm:$0xff]  ;;  %s1511_s0 = sshll.u32 %s2581_s12, 4  ;;  %s1512_s0 = int_to_ptr.hbm [resolvable:$true] %s1511_s0 }
 0x6f8   :  { %vm2614_vm5 = vmmov %vm2611_vm1 }
 0x6f9   :  { %v1269_v55 = vmul.f32 %v1767_v28, %v1268_v38  ;;  %v1420_v38 = vld [vmem:[%s2577_s8 + $0x10] sm:$0xff] }
 0x6fb   :  { %v1270_v33 = vadd.f32 %v1767_v28, %v1269_v55 }
 0x6fc   :  { %v1707_v9 = vpop.permute.xlu1 %1706 }
 0x6fd   :  { %v1708_v16 = vunpack.i.l.bf16 %v1707_v9  ;;  %v1709_v44 = vunpack.i.h.bf16 %v1707_v9  ;;  %v1274_v49 = vsel %vm1273_vm11, %v1767_v28, %v1270_v33 }
 0x6fe   :  { %v1279_v7 = vsel %vm1276_vm8, %v1278_v3, %v1274_v49  ;;  %vm2615_vm8 = vmmov %vm2611_vm1 }
 0x6ff   :  { %1044 = vmatpush.msra.mxu0 %v1708_v16  ;;  %v1280_v11 = vmul.f32 %v2429_v4, %v1279_v7  ;;  %v1458_v7 = vld [vmem:[%s2579_s10 + $0x8] sm:$0xff] }
 0x700   :  { %v1712_v32 = vpop.permute.xlu0 %1711 }
 0x701   :  { %v1713_v21 = vunpack.i.l.bf16 %v1712_v32  ;;  %1045 = vmatpush.msra.mxu0 %v1709_v44  ;;  %v1714_v5 = vunpack.i.h.bf16 %v1712_v32  ;;  %v1463_v32 = vld [vmem:[%s2579_s10 + $0x30] sm:$0xff] }
 0x702   :  { %1552 = vmatmul.msk.f32.vlgmr.msra.gmra.mxu0 %vm330_vm12, %v1020_v41  ;;  %v1462_v41 = vld [vmem:[%s2579_s10 + $0x28] sm:$0xff]  ;;  %1485 = vmatpush.msrb.mxu3 %v1463_v32 }
 0x703   :  { %1304 = vmatpush.msrb.mxu0 %v1718_v2  ;;  %1174 = vmatpush.msra.mxu2 %v1713_v21  ;;  %v1460_v2 = vld [vmem:[%s2579_s10 + $0x18] sm:$0xff] }
 0x704   :  { %v780_v40 = vpop.permute.xlu1 %779  ;;  %1486 = vmatpush.msrb.mxu3 %v1462_v41 }
 0x705   :  { %1305 = vmatpush.msrb.mxu0 %v1719_v46  ;;  %1175 = vmatpush.msra.mxu2 %v1714_v5 }
 0x706   :  { %1556 = vmatmul.msk.f32.vlgmr.msra.gmra.mxu2 %vm330_vm12, %v1150_v6  ;;  %1487 = vmatpush.msrb.mxu3 %v1461_v31  ;;  %v1459_v6 = vld [vmem:[%s2579_s10 + $0x10] sm:$0xff] }
 0x707   :  { %1444 = vmatpush.msrb.mxu2 %v1421_v0 }
 0x708   :  { %v776_v1 = vpop.permute.xlu0 %775  ;;  %1488 = vmatpush.msrb.mxu3 %v1460_v2 }
 0x709   :  { %v786_v35 = vsel %vm249_vm14, %v2212_v19, %v776_v1  ;;  %1445 = vmatpush.msrb.mxu2 %v1420_v38  ;;  %v1457_v1 = vld [vmem:[%s2579_s10] sm:$0xff] }
 0x70a   :  { %v787_v13 = vsel %vm330_vm12, %v786_v35, %v780_v40  ;;  %1560 = vmatmul.msk.f32.vlgmr.msrb.gmra.mxu0 %vm330_vm12, %v1280_v11  ;;  %1489 = vmatpush.msrb.mxu3 %v1459_v6  ;;  %v1724_v11 = vld [vmem:[%s2578_s9] ss:$0 sm:$0xff] }
 0x70b   :  { %v789_v62 = vsel %vm788_vm7, %v787_v13, %v784_v51  ;;  %1446 = vmatpush.msrb.mxu2 %v1419_v52 }
 0x70c   :  { %1561 = vmatmul.msk.f32.vlgmr.msra.gmra.mxu1 %vm2608_vm9, %v789_v62  ;;  %1490 = vmatpush.msrb.mxu3 %v1458_v7  ;;  %vm2617_vm9 = vmmov %vm2611_vm1 }
 0x70d   :  { %1447 = vmatpush.msrb.mxu2 %v1418_v53 }
 0x70e   :  { %1491 = vmatpush.msrb.mxu3 %v1457_v1 }
 0x773   :  { %v917_v43 = vpop.f32.mrf.mxu2 }
 0x77f   :  { %v1047_v30 = vpop.f32.mrf.mxu0 }
 0x780   :  { %1311 = vrot.lane.b32.xlu0 %v1047_v30, %s1846_s21 }
 0x787   :  { %v1307_v45 = vpop.f32.mrf.mxu0 }
 0x788   :  { %1319 = vrot.lane.b32.xlu2 %v1307_v45, %s1845_s20 }
 0x789   :  { %v1177_v4 = vpop.f32.mrf.mxu2  ;;  %v1352_v19 = vpop.f32.mrf.mxu1 }
 0x78a   :  { %1315 = vrot.lane.b32.xlu1 %v1177_v4, %s1844_s19  ;;  %v1358_v15 = vmax.f32 %v1352_v19, 0.0 }
 0x78c   :  { %v2486_v18 = vadd.f32 %v1772_v17, %v1358_v15 }
 0x78e   :  { %v1364_v20 = vsel %vm2609_vm15, %v2486_v18, 0.0 }
 0x7aa   :  { %1365 = vadd.xlane.f32.xlu0 %v1364_v20 }
 0x7e2   :  { %v1320_v22 = vpop.permute.xlu2 %1319 }
 0x7f2   :  { %v1312_v60 = vpop.permute.xlu0 %1311 }
 0x7f3   :  { %v1322_v47 = vsel %vm249_vm14, %v917_v43, %v1312_v60  ;;  %vm2612_vm14 = vmmov %vm2611_vm1 }
 0x7fc   :  { %v1316_v39 = vpop.permute.xlu1 %1315 }
 0x7fd   :  { %v1323_v24 = vsel %vm330_vm12, %v1322_v47, %v1316_v39 }
 0x7fe   :  { %v1324_v58 = vsel %vm788_vm7, %v1323_v24, %v1320_v22  ;;  %vm2616_vm7 = vmmov %vm2611_vm1 }
 0x7ff   :  { %1562 = vmatmul.msk.f32.gmra.mxu1 %vm2610_vm10, %v1324_v58 }
 0x81d   :  { %v1366_v48 = vpop.xlane.xlu0 %1365 }
 0x81e   :  { %v1370_v23 = vmul.f32 %v1366_v48, %v1930_v14 }
 0x820   :  { %v1372_v25 = vsub.f32 %v2486_v18, %v1370_v23 }
 0x822   :  { %v1374_v37 = vmul.f32 %v1372_v25, %v1372_v25 }
 0x824   :  { %v1376_v26 = vsel %vm2611_vm1, %v1374_v37, 0.0 }
 0x825   :  { %1377 = vadd.xlane.f32.xlu2 %v1376_v26 }
 0x87c   :  { %v1355_v27 = vpop.f32.mrf.mxu1 }
 0x87d   :  { %v1359_v28 = vmax.f32 %v1355_v27, 0.0 }
 0x87f   :  { %v2500_v50 = vadd.f32 %v1773_v29, %v1359_v28 }
 0x881   :  { %v1367_v63 = vsel %vm2612_vm14, %v2500_v50, 0.0 }
 0x882   :  { %1368 = vadd.xlane.f32.xlu1 %v1367_v63 }
 0x898   :  { %v1378_v54 = vpop.xlane.xlu2 %1377 }
 0x899   :  { %v1382_v55 = vmul.f32 %v1378_v54, %v1930_v14 }
 0x89b   :  { %v1384_v56 = vadd.f32 1e-05, %v1382_v55 }
 0x89d   :  { %1768 = vrsqrt.f32 %v1384_v56  ;;  %vm1392_vm13 = vweird.f32 %v1384_v56 }
 0x8a3   :  { %v1769_v57 = vpop.eup %1768 }
 0x8a4   :  { %v1387_v59 = vmul.f32 %v1769_v57, %v1384_v56  ;;  %vm1393_vm12 = vweird.f32 %v1769_v57 }
 0x8a5   :  { %vm1394_vm0 = vmor %vm1392_vm13, %vm1393_vm12 }
 0x8a6   :  { %v1388_v9 = vmul.f32 %v1769_v57, %v1387_v59 }
 0x8a8   :  { %v1389_v10 = vmul.f32 0.5, %v1388_v9 }
 0x8aa   :  { %v1390_v12 = vsub.f32 1.5, %v1389_v10 }
 0x8ac   :  { %v1391_v16 = vmul.f32 %v1769_v57, %v1390_v12 }
 0x8ae   :  { %v1395_v33 = vsel %vm1394_vm0, %v1769_v57, %v1391_v16 }
 0x8af   :  { %v1406_v42 = vmul.f32 %v1395_v33, %v1372_v25 }
 0x8b1   :  { %v1411_v34 = vmul.f32 %v1722_v8, %v1406_v42 }
 0x8b3   :  { %v1416_v44 = vadd.f32 %v1723_v36, %v1411_v34 }
 0x8b5   :  { %1563 = vmatmul.msk.f32.vlgmr.msrb.gmra.mxu2 %vm2613_vm2, %v1416_v44 }
 0x8f5   :  { %v1369_v21 = vpop.xlane.xlu1 %1368 }
 0x8f6   :  { %v1371_v49 = vmul.f32 %v1369_v21, %v1930_v14 }
 0x8f8   :  { %v1373_v3 = vsub.f32 %v2500_v50, %v1371_v49 }
 0x8fa   :  { %v1375_v46 = vmul.f32 %v1373_v3, %v1373_v3 }
 0x8fc   :  { %v1379_v5 = vsel %vm2614_vm5, %v1375_v46, 0.0 }
 0x8fd   :  { %1380 = vadd.xlane.f32.xlu0 %v1379_v5 }
 0x938   :  { %v1449_v40 = vpop.f32.mrf.mxu2 }
 0x939   :  { %v1450_v35 = vadd.f32 %v1724_v11, %v1449_v40 }
 0x93b   :  { %v1455_v51 = vmax.f32 %v1450_v35, 0.0 }
 0x93d   :  { %1565 = vmatmul.msk.f32.vlgmr.msrb.gmra.mxu3 %vm1469_vm3, %v1455_v51 }
 0x970   :  { %v1381_v13 = vpop.xlane.xlu0 %1380 }
 0x971   :  { %v1383_v62 = vmul.f32 %v1381_v13, %v1930_v14  ;;  %v1725_v14 = vld [vmem:[%s2580_s11] ss:$0 sm:$0xff]  ;;  %s1509_s11 = sshll.u32 %s1847_s18, 4  ;;  %s1510_s11 = int_to_ptr.vmem [resolvable:$true] %s1509_s11 }
 0x973   :  { %v1385_v30 = vadd.f32 1e-05, %v1383_v62 }
 0x975   :  { %1770 = vrsqrt.f32 %v1385_v30  ;;  %vm1402_vm6 = vweird.f32 %v1385_v30 }
 0x97b   :  { %v1771_v43 = vpop.eup %1770 }
 0x97c   :  { %v1397_v45 = vmul.f32 %v1771_v43, %v1385_v30  ;;  %vm1403_vm4 = vweird.f32 %v1771_v43 }
 0x97d   :  { %vm1404_vm11 = vmor %vm1402_vm6, %vm1403_vm4 }
 0x97e   :  { %v1398_v4 = vmul.f32 %v1771_v43, %v1397_v45 }
 0x980   :  { %v1399_v19 = vmul.f32 0.5, %v1398_v4 }
 0x982   :  { %v1400_v15 = vsub.f32 1.5, %v1399_v19 }
 0x984   :  { %v1401_v17 = vmul.f32 %v1771_v43, %v1400_v15 }
 0x986   :  { %v1405_v20 = vsel %vm1404_vm11, %v1771_v43, %v1401_v17 }
 0x987   :  { %v1407_v60 = vmul.f32 %v1405_v20, %v1373_v3 }
 0x989   :  { %v1412_v47 = vmul.f32 %v1722_v8, %v1407_v60 }
 0x98b   :  { %v1417_v39 = vadd.f32 %v1723_v36, %v1412_v47 }
 0x98d   :  { %1564 = vmatmul.msk.f32.gmra.mxu2 %vm2615_vm8, %v1417_v39 }
 0x9c0   :  { %v1493_v22 = vpop.f32.mrf.mxu3 }
 0x9c1   :  { %v1494_v24 = vadd.f32 %v1725_v14, %v1493_v22 }
 0x9c3   :  { %v1499_v58 = vmax.f32 %v1494_v24, 0.0 }
 0x9c5   :  { %v1501_v48 = vadd.f32 %v1499_v58, %v2486_v18 }
 0x9c7   :  { %1503 = vst.msk [vmem:[#allocation2] sm:$0xff] %vm2616_vm7, %v1501_v48 }
 0xa10   :  { %v1452_v23 = vpop.f32.mrf.mxu2 }
 0xa11   :  { %v1453_v25 = vadd.f32 %v1724_v11, %v1452_v23 }
 0xa13   :  { %v1456_v37 = vmax.f32 %v1453_v25, 0.0 }
 0xa15   :  { %1566 = vmatmul.msk.f32.gmra.mxu3 %vm1469_vm3, %v1456_v37 }
 0xa98   :  { %v1496_v26 = vpop.f32.mrf.mxu3 }
 0xa99   :  { %v1497_v27 = vadd.f32 %v1725_v14, %v1496_v26 }
 0xa9b   :  { %v1500_v28 = vmax.f32 %v1497_v27, 0.0 }
 0xa9d   :  { %v1502_v29 = vadd.f32 %v1500_v28, %v2500_v50 }
 0xa9f   :  { %1504 = vst.msk [vmem:[#allocation2 + $0x8] sm:$0xff] %vm2617_vm9, %v1502_v29 }
 0xaa0   :  { %1517 = dma.vmem_to_hbm [thread:$0]  %s1510_s11, 256, %s1512_s0, [#allocation3], %s1848_s4, %s1848_s4, %s1846_s21  }
 0xaa1   :  { %1798 = dma.done.wait [#allocation3], 256  }
 0xaa2   :  { %1799 = vsyncadd [#allocation3], 4294967040 }
 0xaa3   :  { %1522 = vsyncpa [#allocation3], 1 }

</bundles_post_ra>
